<compile_context>
chip_gen: v6e
topology: v6e:2x2x1
jax: 0.10.0
libtpu: 0.0.40
codegen_flags: <defaults>
</compile_context>

<pallas_src>
import jax
import jax.numpy as jnp
import numpy as np
from jax.experimental import pallas as pl
from jax.experimental.pallas import tpu as pltpu

C_IN = 114
LANES = 128
LATENT = 3
N_GMM = 2
ENC_DIMS = [C_IN, 60, 30, 10, 1]
DEC_DIMS = [1, 10, 30, 60, C_IN]
EST_DIMS = [LATENT, 10, N_GMM]
BN_EPS = 1e-5
COS_EPS = 1e-8

# ---- weight-slab row offsets (8-aligned blocks inside a (W_ROWS,128) slab) --
_W_ENC1 = 0      # (114,60) in rows 0:128 (rows 114:128 zero -> padded x works)
_W_ENC2 = 128    # (60,30)
_W_ENC3 = 192    # (30,10)
_W_ENC4T = 224   # (10,1) stored transposed as (1,10)   -> VPU path
_W_DEC1 = 232    # (1,10)                               -> VPU path
_W_DEC2 = 240    # (10,30)
_W_DEC3 = 256    # (30,60)
_W_DEC4 = 288    # (60,114) cols 114:128 zero-padded
_W_EST1 = 352    # (3,10)                               -> VPU path
_W_EST2T = 360   # (10,2) stored transposed as (2,10)   -> VPU path
W_ROWS = 368

# ---- vector-slab rows: gamma/beta pairs for the 8 BN layers + est biases ----
# rows 0..7  : enc BN (gamma,beta) x4   widths 60,30,10,1
# rows 8..15 : dec BN (gamma,beta) x4   widths 10,30,60,114 (padded to 128)
# row  16    : est b1 (10)
# row  17    : est b2 (2)
V_ROWS = 24

# ---- output-slab lane layout (stats block = lanes 128:256 of (N,256) slab) --
_O_Z = 128        # z     (N,3)
_O_GAMMA = 131    # gamma (N,2)
_O_MU = 133       # mu    rows 0:2, (2,3)
_O_COV = 136      # cov   rows 0:2, (2,9) row-major
_O_PHI = 145      # phi   row 0,   (1,2)
_O_END = 147
OUT_LANES = 2 * LANES


# ------------------------------ Pallas kernel -------------------------------
def dagmm_kernel(x_ref, w_ref, v_ref, o_ref):
    x = x_ref[...]                               # (N,128); lanes C_IN:128 zero
    n = x.shape[0]

    def bn(h, row, width):
        # Train-mode BatchNorm1d, single-pass variance, folded scale.
        g = v_ref[row:row + 1, 0:width]
        be = v_ref[row + 1:row + 2, 0:width]
        m = jnp.mean(h, axis=0, keepdims=True)
        m2 = jnp.mean(h * h, axis=0, keepdims=True)
        var = jnp.maximum(m2 - m * m, 0.0)
        scale = g * jax.lax.rsqrt(var + BN_EPS)
        return h * scale + (be - m * scale)

    # ---- encoder: Linear(bias dropped; BN cancels it) -> BN -> Tanh x3 + tail
    h = jnp.tanh(bn(jnp.dot(x, w_ref[_W_ENC1:_W_ENC1 + LANES, 0:60],
                            preferred_element_type=jnp.float32), 0, 60))
    h = jnp.tanh(bn(jnp.dot(h, w_ref[_W_ENC2:_W_ENC2 + 60, 0:30],
                            preferred_element_type=jnp.float32), 2, 30))
    h = jnp.tanh(bn(jnp.dot(h, w_ref[_W_ENC3:_W_ENC3 + 30, 0:10],
                            preferred_element_type=jnp.float32), 4, 10))
    # (N,10)x(10,1): VPU broadcast-mul + lane reduction (no padded MXU issue).
    w4t = w_ref[_W_ENC4T:_W_ENC4T + 1, 0:10]                    # (1,10)
    z_c = bn(jnp.sum(h * w4t, axis=1, keepdims=True), 6, 1)     # (N,1)

    # ---- decoder
    wd1 = w_ref[_W_DEC1:_W_DEC1 + 1, 0:10]                      # (1,10)
    h = jnp.tanh(bn(z_c * wd1, 8, 10))                          # (N,1)x(1,10) on VPU
    h = jnp.tanh(bn(jnp.dot(h, w_ref[_W_DEC2:_W_DEC2 + 10, 0:30],
                            preferred_element_type=jnp.float32), 10, 30))
    h = jnp.tanh(bn(jnp.dot(h, w_ref[_W_DEC3:_W_DEC3 + 30, 0:60],
                            preferred_element_type=jnp.float32), 12, 60))
    # Final layer computed 128 lanes wide (cols 114:128 of W and gamma/beta are
    # zero, so pad lanes stay exactly 0 through the BN).
    out = bn(jnp.dot(h, w_ref[_W_DEC4:_W_DEC4 + 60, 0:LANES],
                     preferred_element_type=jnp.float32), 14, LANES)   # (N,128)

    # ---- reconstruction features (pad lanes are zero -> full-lane sums exact)
    xy = jnp.sum(x * out, axis=1, keepdims=True)
    xn = jnp.sqrt(jnp.sum(x * x, axis=1, keepdims=True))
    on = jnp.sqrt(jnp.sum(out * out, axis=1, keepdims=True))
    cos = xy / (jnp.maximum(xn, COS_EPS) * jnp.maximum(on, COS_EPS))
    euc = jnp.sqrt(jnp.sum((x - out) ** 2, axis=1, keepdims=True)) / xn
    z = jnp.concatenate([z_c, cos, euc], axis=1)                 # (N,3)

    # ---- estimation net: Linear -> Tanh -> Dropout -> Linear -> Softmax(dim=0)
    # TODO(synk): Dropout(0.5) implemented as identity (eval-mode); train-mode
    # dropout is stochastic and has no deterministic equivalent here.
    we1 = w_ref[_W_EST1:_W_EST1 + 3, 0:10]                       # (3,10)
    b1 = v_ref[16:17, 0:10]
    e = jnp.tanh(z[:, 0:1] * we1[0:1, :] + z[:, 1:2] * we1[1:2, :]
                 + z[:, 2:3] * we1[2:3, :] + b1)                 # (N,10) on VPU
    we2t = w_ref[_W_EST2T:_W_EST2T + 2, 0:10]                    # (2,10)
    b2 = v_ref[17:18, 0:2]
    logits = jnp.concatenate(
        [jnp.sum(e * we2t[k:k + 1, :], axis=1, keepdims=True)
         for k in range(N_GMM)], axis=1) + b2                    # (N,2)
    mx = jnp.max(logits, axis=0, keepdims=True)                  # softmax over batch
    ex = jnp.exp(logits - mx)
    gamma = ex / jnp.sum(ex, axis=0, keepdims=True)              # (N,2)

    # ---- GMM statistics: VPU broadcast-mul + sublane reductions (no einsum)
    sum_g = jnp.sum(gamma, axis=0, keepdims=True)                # (1,K)
    phi = sum_g / n                                              # (1,K)
    mu_rows, cov_rows = [], []
    for k in range(N_GMM):
        gk = gamma[:, k:k + 1]                                   # (N,1)
        sk = sum_g[:, k:k + 1]                                   # (1,1)
        mu_k = jnp.sum(gk * z, axis=0, keepdims=True) / sk       # (1,D)
        zm = z - mu_k                                            # (N,D)
        outer = jnp.concatenate(
            [zm[:, i:i + 1] * zm[:, j:j + 1]
             for i in range(LATENT) for j in range(LATENT)], axis=1)  # (N,D*D)
        cov_rows.append(jnp.sum(gk * outer, axis=0, keepdims=True) / sk)
        mu_rows.append(mu_k)
    mu = jnp.concatenate(mu_rows, axis=0)                        # (K,D)
    covf = jnp.concatenate(cov_rows, axis=0)                     # (K,D*D)

    # ---- pack everything into one lane-dense (N,256) slab: single full store
    def pad_rows(a):
        return jnp.concatenate(
            [a, jnp.zeros((n - a.shape[0], a.shape[1]), jnp.float32)], axis=0)

    stats = jnp.concatenate(
        [z, gamma, pad_rows(mu), pad_rows(covf), pad_rows(phi),
         jnp.zeros((n, LANES - (_O_END - LANES)), jnp.float32)], axis=1)  # (N,128)
    o_ref[...] = jnp.concatenate([out, stats], axis=1)           # (N,256)


# ----------------------------- host-side packing ----------------------------
def _pack_params(params):
    enc_p, dec_p, est_p = params

    def put(buf, row, mat):
        fin, fout = mat.shape
        return buf.at[row:row + fin, 0:fout].set(mat)

    w = jnp.zeros((W_ROWS, LANES), jnp.float32)
    w = put(w, _W_ENC1, enc_p[0][0])
    w = put(w, _W_ENC2, enc_p[1][0])
    w = put(w, _W_ENC3, enc_p[2][0])
    w = put(w, _W_ENC4T, enc_p[3][0].T)
    w = put(w, _W_DEC1, dec_p[0][0])
    w = put(w, _W_DEC2, dec_p[1][0])
    w = put(w, _W_DEC3, dec_p[2][0])
    w = put(w, _W_DEC4, dec_p[3][0])
    w = put(w, _W_EST1, est_p[0][0])
    w = put(w, _W_EST2T, est_p[1][0].T)

    v = jnp.zeros((V_ROWS, LANES), jnp.float32)
    row = 0
    # Note: the Linear biases of enc/dec layers are intentionally NOT packed --
    # train-mode BatchNorm subtracts the batch mean, cancelling them exactly.
    for (_, _, g, be) in list(enc_p) + list(dec_p):
        width = g.shape[1]
        v = v.at[row, 0:width].set(g[0])
        v = v.at[row + 1, 0:width].set(be[0])
        row += 2
    v = v.at[16, 0:EST_DIMS[1]].set(est_p[0][1][0])
    v = v.at[17, 0:EST_DIMS[2]].set(est_p[1][1][0])
    return w, v


def _dagmm_forward_impl(x, params):
    n = x.shape[0]
    w_slab, v_slab = _pack_params(params)
    x_pad = jnp.concatenate(
        [x.astype(jnp.float32), jnp.zeros((n, LANES - C_IN), jnp.float32)], axis=1)

    vmem = pl.BlockSpec(memory_space=pltpu.MemorySpace.VMEM)
    # TODO(synk): for large batches / many model instances, add a "parallel"
    # grid axis over batch tiles so both v7x TensorCores are used; with N=8
    # the whole problem fits one grid-less invocation.
    slab = pl.pallas_call(
        dagmm_kernel,
        out_shape=jax.ShapeDtypeStruct((n, OUT_LANES), jnp.float32),
        in_specs=[vmem, vmem, vmem],
        out_specs=vmem,
    )(x_pad, w_slab, v_slab)

    return {
        'output': slab[:, 0:C_IN],
        'z': slab[:, _O_Z:_O_Z + LATENT],
        'gamma': slab[:, _O_GAMMA:_O_GAMMA + N_GMM],
        'phi': slab[0, _O_PHI:_O_PHI + N_GMM],
        'mu': slab[0:N_GMM, _O_MU:_O_MU + LATENT],
        'cov': slab[0:N_GMM, _O_COV:_O_COV + LATENT * LATENT].reshape(
            N_GMM, LATENT, LATENT),
    }


dagmm_forward = jax.jit(_dagmm_forward_impl)


# ------------------------------ pure-JAX reference ---------------------------
def dagmm_reference(x, params):
    enc_p, dec_p, est_p = params

    def bn_ref(h, g, be):
        m = jnp.mean(h, axis=0, keepdims=True)
        v = jnp.mean((h - m) ** 2, axis=0, keepdims=True)
        return (h - m) / jnp.sqrt(v + BN_EPS) * g + be

    h = x
    for i, (w, b, g, be) in enumerate(enc_p):
        h = bn_ref(h @ w + b, g, be)
        if i < len(enc_p) - 1:
            h = jnp.tanh(h)
    z_c = h
    h = z_c
    for i, (w, b, g, be) in enumerate(dec_p):
        h = bn_ref(h @ w + b, g, be)
        if i < len(dec_p) - 1:
            h = jnp.tanh(h)
    out = h

    xy = jnp.sum(x * out, axis=1)
    xn = jnp.sqrt(jnp.sum(x * x, axis=1))
    on = jnp.sqrt(jnp.sum(out * out, axis=1))
    cos = xy / (jnp.maximum(xn, COS_EPS) * jnp.maximum(on, COS_EPS))
    euc = jnp.sqrt(jnp.sum((x - out) ** 2, axis=1)) / xn
    z = jnp.concatenate([z_c, cos[:, None], euc[:, None]], axis=1)

    (w1, b1), (w2, b2) = est_p
    e = jnp.tanh(z @ w1 + b1) @ w2 + b2
    gamma = jax.nn.softmax(e, axis=0)

    n = x.shape[0]
    sum_g = jnp.sum(gamma, axis=0)
    phi = sum_g / n
    mu = jnp.sum(gamma[:, :, None] * z[:, None, :], axis=0) / sum_g[:, None]
    zm = z[:, None, :] - mu[None, :, :]
    outer = zm[:, :, :, None] * zm[:, :, None, :]
    cov = jnp.sum(gamma[:, :, None, None] * outer, axis=0) / sum_g[:, None, None]
    return out, z, gamma, phi, mu, cov


# ---------------------------- parameter init --------------------------------
def init_params(key):
    def lin_init(k, fan_in, fan_out):
        k1, k2 = jax.random.split(k)
        bound = 1.0 / np.sqrt(fan_in)
        w = jax.random.uniform(k1, (fan_in, fan_out), jnp.float32, -bound, bound)
        b = jax.random.uniform(k2, (1, fan_out), jnp.float32, -bound, bound)
        return w, b

    keys = jax.random.split(key, 10)
    ki = 0
    enc_p, dec_p, est_p = [], [], []
    for i in range(4):
        w, b = lin_init(keys[ki], ENC_DIMS[i], ENC_DIMS[i + 1]); ki += 1
        enc_p.append((w, b,
                      jnp.ones((1, ENC_DIMS[i + 1]), jnp.float32),
                      jnp.zeros((1, ENC_DIMS[i + 1]), jnp.float32)))
    for i in range(4):
        w, b = lin_init(keys[ki], DEC_DIMS[i], DEC_DIMS[i + 1]); ki += 1
        dec_p.append((w, b,
                      jnp.ones((1, DEC_DIMS[i + 1]), jnp.float32),
                      jnp.zeros((1, DEC_DIMS[i + 1]), jnp.float32)))
    for i in range(2):
        w, b = lin_init(keys[ki], EST_DIMS[i], EST_DIMS[i + 1]); ki += 1
        est_p.append((w, b))
    return tuple(enc_p), tuple(dec_p), tuple(est_p)


if __name__ == "__main__":
    key = jax.random.PRNGKey(0)
    kx, kp = jax.random.split(key)
    batch = 8
    x = jax.random.normal(kx, (batch, C_IN), dtype=jnp.float32)
    params = init_params(kp)

    res = dagmm_forward(x, params)
    jax.block_until_ready(res)

    ref_out, ref_z, ref_gamma, ref_phi, ref_mu, ref_cov = dagmm_reference(x, params)
    checks = [(res['output'], ref_out), (res['z'], ref_z),
              (res['gamma'], ref_gamma), (res['phi'], ref_phi),
              (res['mu'], ref_mu), (res['cov'], ref_cov)]
    for got, want in checks:
        np.testing.assert_allclose(np.asarray(got), np.asarray(want),
                                   rtol=1e-2, atol=1e-3)
    print("KERNEL_OK")
</pallas_src>

<mosaic_0001>
module attributes {stable_mosaic.version = 11 : i64} {
  func.func @dagmm_kernel(%arg0: memref<8x128xf32, #tpu.memory_space<vmem>>, %arg1: memref<368x128xf32, #tpu.memory_space<vmem>>, %arg2: memref<24x128xf32, #tpu.memory_space<vmem>>, %arg3: memref<8x256xf32, #tpu.memory_space<vmem>>) attributes {dimension_semantics = [], scalar_prefetch = 0 : i64, scratch_operands = 0 : i64, tpu.core_type = #tpu.core_type<tc>} {
    %c0 = arith.constant 0 : index
    %c0_0 = arith.constant 0 : index
    %0 = vector.load %arg0[%c0, %c0_0] : memref<8x128xf32, #tpu.memory_space<vmem>>, vector<8x128xf32>
    %c0_1 = arith.constant 0 : index
    %c0_2 = arith.constant 0 : index
    %1 = vector.load %arg1[%c0_1, %c0_2] : memref<368x128xf32, #tpu.memory_space<vmem>>, vector<128x60xf32>
    %cst = arith.constant dense<0.000000e+00> : vector<8x60xf32>
    %2 = tpu.matmul %0, %1, %cst {dimension_numbers = #tpu.dot_dimension_numbers<[1], [0], [0], [1], [0, 0, 1, 1], [], []>} : vector<8x128xf32>, vector<128x60xf32>, vector<8x60xf32> -> vector<8x60xf32>
    %c0_3 = arith.constant 0 : index
    %c0_4 = arith.constant 0 : index
    %3 = vector.load %arg2[%c0_3, %c0_4] : memref<24x128xf32, #tpu.memory_space<vmem>>, vector<1x60xf32>
    %c1 = arith.constant 1 : index
    %c0_5 = arith.constant 0 : index
    %4 = vector.load %arg2[%c1, %c0_5] : memref<24x128xf32, #tpu.memory_space<vmem>>, vector<1x60xf32>
    %cst_6 = arith.constant dense<0.000000e+00> : vector<60xf32>
    %5 = vector.multi_reduction <add>, %2, %cst_6 [0] : vector<8x60xf32> to vector<60xf32>
    %6 = vector.shape_cast %5 : vector<60xf32> to vector<1x60xf32>
    %cst_7 = arith.constant 8.000000e+00 : f32
    %7 = vector.broadcast %cst_7 : f32 to vector<1x60xf32>
    %8 = arith.divf %6, %7 : vector<1x60xf32>
    %9 = arith.mulf %2, %2 : vector<8x60xf32>
    %cst_8 = arith.constant dense<0.000000e+00> : vector<60xf32>
    %10 = vector.multi_reduction <add>, %9, %cst_8 [0] : vector<8x60xf32> to vector<60xf32>
    %11 = vector.shape_cast %10 : vector<60xf32> to vector<1x60xf32>
    %cst_9 = arith.constant 8.000000e+00 : f32
    %12 = vector.broadcast %cst_9 : f32 to vector<1x60xf32>
    %13 = arith.divf %11, %12 : vector<1x60xf32>
    %14 = arith.mulf %8, %8 : vector<1x60xf32>
    %15 = arith.subf %13, %14 : vector<1x60xf32>
    %cst_10 = arith.constant 0.000000e+00 : f32
    %16 = vector.broadcast %cst_10 : f32 to vector<1x60xf32>
    %17 = arith.maximumf %15, %16 : vector<1x60xf32>
    %cst_11 = arith.constant 9.99999974E-6 : f32
    %18 = vector.broadcast %cst_11 : f32 to vector<1x60xf32>
    %19 = arith.addf %17, %18 : vector<1x60xf32>
    %20 = math.rsqrt %19 : vector<1x60xf32>
    %21 = arith.mulf %3, %20 : vector<1x60xf32>
    %22 = vector.broadcast %21 : vector<1x60xf32> to vector<8x60xf32>
    %23 = arith.mulf %2, %22 : vector<8x60xf32>
    %24 = arith.mulf %8, %21 : vector<1x60xf32>
    %25 = arith.subf %4, %24 : vector<1x60xf32>
    %26 = vector.broadcast %25 : vector<1x60xf32> to vector<8x60xf32>
    %27 = arith.addf %23, %26 : vector<8x60xf32>
    %28 = math.tanh %27 : vector<8x60xf32>
    %c128 = arith.constant 128 : index
    %c0_12 = arith.constant 0 : index
    %29 = vector.load %arg1[%c128, %c0_12] : memref<368x128xf32, #tpu.memory_space<vmem>>, vector<60x30xf32>
    %cst_13 = arith.constant dense<0.000000e+00> : vector<8x30xf32>
    %30 = tpu.matmul %28, %29, %cst_13 {dimension_numbers = #tpu.dot_dimension_numbers<[1], [0], [0], [1], [0, 0, 1, 1], [], []>} : vector<8x60xf32>, vector<60x30xf32>, vector<8x30xf32> -> vector<8x30xf32>
    %c2 = arith.constant 2 : index
    %c0_14 = arith.constant 0 : index
    %31 = vector.load %arg2[%c2, %c0_14] : memref<24x128xf32, #tpu.memory_space<vmem>>, vector<1x30xf32>
    %c3 = arith.constant 3 : index
    %c0_15 = arith.constant 0 : index
    %32 = vector.load %arg2[%c3, %c0_15] : memref<24x128xf32, #tpu.memory_space<vmem>>, vector<1x30xf32>
    %cst_16 = arith.constant dense<0.000000e+00> : vector<30xf32>
    %33 = vector.multi_reduction <add>, %30, %cst_16 [0] : vector<8x30xf32> to vector<30xf32>
    %34 = vector.shape_cast %33 : vector<30xf32> to vector<1x30xf32>
    %cst_17 = arith.constant 8.000000e+00 : f32
    %35 = vector.broadcast %cst_17 : f32 to vector<1x30xf32>
    %36 = arith.divf %34, %35 : vector<1x30xf32>
    %37 = arith.mulf %30, %30 : vector<8x30xf32>
    %cst_18 = arith.constant dense<0.000000e+00> : vector<30xf32>
    %38 = vector.multi_reduction <add>, %37, %cst_18 [0] : vector<8x30xf32> to vector<30xf32>
    %39 = vector.shape_cast %38 : vector<30xf32> to vector<1x30xf32>
    %cst_19 = arith.constant 8.000000e+00 : f32
    %40 = vector.broadcast %cst_19 : f32 to vector<1x30xf32>
    %41 = arith.divf %39, %40 : vector<1x30xf32>
    %42 = arith.mulf %36, %36 : vector<1x30xf32>
    %43 = arith.subf %41, %42 : vector<1x30xf32>
    %cst_20 = arith.constant 0.000000e+00 : f32
    %44 = vector.broadcast %cst_20 : f32 to vector<1x30xf32>
    %45 = arith.maximumf %43, %44 : vector<1x30xf32>
    %cst_21 = arith.constant 9.99999974E-6 : f32
    %46 = vector.broadcast %cst_21 : f32 to vector<1x30xf32>
    %47 = arith.addf %45, %46 : vector<1x30xf32>
    %48 = math.rsqrt %47 : vector<1x30xf32>
    %49 = arith.mulf %31, %48 : vector<1x30xf32>
    %50 = vector.broadcast %49 : vector<1x30xf32> to vector<8x30xf32>
    %51 = arith.mulf %30, %50 : vector<8x30xf32>
    %52 = arith.mulf %36, %49 : vector<1x30xf32>
    %53 = arith.subf %32, %52 : vector<1x30xf32>
    %54 = vector.broadcast %53 : vector<1x30xf32> to vector<8x30xf32>
    %55 = arith.addf %51, %54 : vector<8x30xf32>
    %56 = math.tanh %55 : vector<8x30xf32>
    %c192 = arith.constant 192 : index
    %c0_22 = arith.constant 0 : index
    %57 = vector.load %arg1[%c192, %c0_22] : memref<368x128xf32, #tpu.memory_space<vmem>>, vector<30x10xf32>
    %cst_23 = arith.constant dense<0.000000e+00> : vector<8x10xf32>
    %58 = tpu.matmul %56, %57, %cst_23 {dimension_numbers = #tpu.dot_dimension_numbers<[1], [0], [0], [1], [0, 0, 1, 1], [], []>} : vector<8x30xf32>, vector<30x10xf32>, vector<8x10xf32> -> vector<8x10xf32>
    %c4 = arith.constant 4 : index
    %c0_24 = arith.constant 0 : index
    %59 = vector.load %arg2[%c4, %c0_24] : memref<24x128xf32, #tpu.memory_space<vmem>>, vector<1x10xf32>
    %c5 = arith.constant 5 : index
    %c0_25 = arith.constant 0 : index
    %60 = vector.load %arg2[%c5, %c0_25] : memref<24x128xf32, #tpu.memory_space<vmem>>, vector<1x10xf32>
    %cst_26 = arith.constant dense<0.000000e+00> : vector<10xf32>
    %61 = vector.multi_reduction <add>, %58, %cst_26 [0] : vector<8x10xf32> to vector<10xf32>
    %62 = vector.shape_cast %61 : vector<10xf32> to vector<1x10xf32>
    %cst_27 = arith.constant 8.000000e+00 : f32
    %63 = vector.broadcast %cst_27 : f32 to vector<1x10xf32>
    %64 = arith.divf %62, %63 : vector<1x10xf32>
    %65 = arith.mulf %58, %58 : vector<8x10xf32>
    %cst_28 = arith.constant dense<0.000000e+00> : vector<10xf32>
    %66 = vector.multi_reduction <add>, %65, %cst_28 [0] : vector<8x10xf32> to vector<10xf32>
    %67 = vector.shape_cast %66 : vector<10xf32> to vector<1x10xf32>
    %cst_29 = arith.constant 8.000000e+00 : f32
    %68 = vector.broadcast %cst_29 : f32 to vector<1x10xf32>
    %69 = arith.divf %67, %68 : vector<1x10xf32>
    %70 = arith.mulf %64, %64 : vector<1x10xf32>
    %71 = arith.subf %69, %70 : vector<1x10xf32>
    %cst_30 = arith.constant 0.000000e+00 : f32
    %72 = vector.broadcast %cst_30 : f32 to vector<1x10xf32>
    %73 = arith.maximumf %71, %72 : vector<1x10xf32>
    %cst_31 = arith.constant 9.99999974E-6 : f32
    %74 = vector.broadcast %cst_31 : f32 to vector<1x10xf32>
    %75 = arith.addf %73, %74 : vector<1x10xf32>
    %76 = math.rsqrt %75 : vector<1x10xf32>
    %77 = arith.mulf %59, %76 : vector<1x10xf32>
    %78 = vector.broadcast %77 : vector<1x10xf32> to vector<8x10xf32>
    %79 = arith.mulf %58, %78 : vector<8x10xf32>
    %80 = arith.mulf %64, %77 : vector<1x10xf32>
    %81 = arith.subf %60, %80 : vector<1x10xf32>
    %82 = vector.broadcast %81 : vector<1x10xf32> to vector<8x10xf32>
    %83 = arith.addf %79, %82 : vector<8x10xf32>
    %84 = math.tanh %83 : vector<8x10xf32>
    %c224 = arith.constant 224 : index
    %c0_32 = arith.constant 0 : index
    %85 = vector.load %arg1[%c224, %c0_32] : memref<368x128xf32, #tpu.memory_space<vmem>>, vector<1x10xf32>
    %86 = vector.broadcast %85 : vector<1x10xf32> to vector<8x10xf32>
    %87 = arith.mulf %84, %86 : vector<8x10xf32>
    %cst_33 = arith.constant dense<0.000000e+00> : vector<8xf32>
    %88 = vector.multi_reduction <add>, %87, %cst_33 [1] : vector<8x10xf32> to vector<8xf32>
    %89 = vector.shape_cast %88 : vector<8xf32> to vector<8x1xf32>
    %c6 = arith.constant 6 : index
    %c0_34 = arith.constant 0 : index
    %90 = vector.load %arg2[%c6, %c0_34] : memref<24x128xf32, #tpu.memory_space<vmem>>, vector<1x1xf32>
    %c7 = arith.constant 7 : index
    %c0_35 = arith.constant 0 : index
    %91 = vector.load %arg2[%c7, %c0_35] : memref<24x128xf32, #tpu.memory_space<vmem>>, vector<1x1xf32>
    %cst_36 = arith.constant dense<0.000000e+00> : vector<1xf32>
    %92 = vector.multi_reduction <add>, %89, %cst_36 [0] : vector<8x1xf32> to vector<1xf32>
    %93 = vector.shape_cast %92 : vector<1xf32> to vector<1x1xf32>
    %cst_37 = arith.constant 8.000000e+00 : f32
    %94 = vector.broadcast %cst_37 : f32 to vector<1x1xf32>
    %95 = arith.divf %93, %94 : vector<1x1xf32>
    %96 = arith.mulf %89, %89 : vector<8x1xf32>
    %cst_38 = arith.constant dense<0.000000e+00> : vector<1xf32>
    %97 = vector.multi_reduction <add>, %96, %cst_38 [0] : vector<8x1xf32> to vector<1xf32>
    %98 = vector.shape_cast %97 : vector<1xf32> to vector<1x1xf32>
    %cst_39 = arith.constant 8.000000e+00 : f32
    %99 = vector.broadcast %cst_39 : f32 to vector<1x1xf32>
    %100 = arith.divf %98, %99 : vector<1x1xf32>
    %101 = arith.mulf %95, %95 : vector<1x1xf32>
    %102 = arith.subf %100, %101 : vector<1x1xf32>
    %cst_40 = arith.constant 0.000000e+00 : f32
    %103 = vector.broadcast %cst_40 : f32 to vector<1x1xf32>
    %104 = arith.maximumf %102, %103 : vector<1x1xf32>
    %cst_41 = arith.constant 9.99999974E-6 : f32
    %105 = vector.broadcast %cst_41 : f32 to vector<1x1xf32>
    %106 = arith.addf %104, %105 : vector<1x1xf32>
    %107 = math.rsqrt %106 : vector<1x1xf32>
    %108 = arith.mulf %90, %107 : vector<1x1xf32>
    %109 = vector.broadcast %108 : vector<1x1xf32> to vector<8x1xf32>
    %110 = arith.mulf %89, %109 : vector<8x1xf32>
    %111 = arith.mulf %95, %108 : vector<1x1xf32>
    %112 = arith.subf %91, %111 : vector<1x1xf32>
    %113 = vector.broadcast %112 : vector<1x1xf32> to vector<8x1xf32>
    %114 = arith.addf %110, %113 : vector<8x1xf32>
    %c232 = arith.constant 232 : index
    %c0_42 = arith.constant 0 : index
    %115 = vector.load %arg1[%c232, %c0_42] : memref<368x128xf32, #tpu.memory_space<vmem>>, vector<1x10xf32>
    %116 = vector.broadcast %114 : vector<8x1xf32> to vector<8x10xf32>
    %117 = vector.broadcast %115 : vector<1x10xf32> to vector<8x10xf32>
    %118 = arith.mulf %116, %117 : vector<8x10xf32>
    %c8 = arith.constant 8 : index
    %c0_43 = arith.constant 0 : index
    %119 = vector.load %arg2[%c8, %c0_43] : memref<24x128xf32, #tpu.memory_space<vmem>>, vector<1x10xf32>
    %c9 = arith.constant 9 : index
    %c0_44 = arith.constant 0 : index
    %120 = vector.load %arg2[%c9, %c0_44] : memref<24x128xf32, #tpu.memory_space<vmem>>, vector<1x10xf32>
    %cst_45 = arith.constant dense<0.000000e+00> : vector<10xf32>
    %121 = vector.multi_reduction <add>, %118, %cst_45 [0] : vector<8x10xf32> to vector<10xf32>
    %122 = vector.shape_cast %121 : vector<10xf32> to vector<1x10xf32>
    %cst_46 = arith.constant 8.000000e+00 : f32
    %123 = vector.broadcast %cst_46 : f32 to vector<1x10xf32>
    %124 = arith.divf %122, %123 : vector<1x10xf32>
    %125 = arith.mulf %118, %118 : vector<8x10xf32>
    %cst_47 = arith.constant dense<0.000000e+00> : vector<10xf32>
    %126 = vector.multi_reduction <add>, %125, %cst_47 [0] : vector<8x10xf32> to vector<10xf32>
    %127 = vector.shape_cast %126 : vector<10xf32> to vector<1x10xf32>
    %cst_48 = arith.constant 8.000000e+00 : f32
    %128 = vector.broadcast %cst_48 : f32 to vector<1x10xf32>
    %129 = arith.divf %127, %128 : vector<1x10xf32>
    %130 = arith.mulf %124, %124 : vector<1x10xf32>
    %131 = arith.subf %129, %130 : vector<1x10xf32>
    %cst_49 = arith.constant 0.000000e+00 : f32
    %132 = vector.broadcast %cst_49 : f32 to vector<1x10xf32>
    %133 = arith.maximumf %131, %132 : vector<1x10xf32>
    %cst_50 = arith.constant 9.99999974E-6 : f32
    %134 = vector.broadcast %cst_50 : f32 to vector<1x10xf32>
    %135 = arith.addf %133, %134 : vector<1x10xf32>
    %136 = math.rsqrt %135 : vector<1x10xf32>
    %137 = arith.mulf %119, %136 : vector<1x10xf32>
    %138 = vector.broadcast %137 : vector<1x10xf32> to vector<8x10xf32>
    %139 = arith.mulf %118, %138 : vector<8x10xf32>
    %140 = arith.mulf %124, %137 : vector<1x10xf32>
    %141 = arith.subf %120, %140 : vector<1x10xf32>
    %142 = vector.broadcast %141 : vector<1x10xf32> to vector<8x10xf32>
    %143 = arith.addf %139, %142 : vector<8x10xf32>
    %144 = math.tanh %143 : vector<8x10xf32>
    %c240 = arith.constant 240 : index
    %c0_51 = arith.constant 0 : index
    %145 = vector.load %arg1[%c240, %c0_51] : memref<368x128xf32, #tpu.memory_space<vmem>>, vector<10x30xf32>
    %cst_52 = arith.constant dense<0.000000e+00> : vector<8x30xf32>
    %146 = tpu.matmul %144, %145, %cst_52 {dimension_numbers = #tpu.dot_dimension_numbers<[1], [0], [0], [1], [0, 0, 1, 1], [], []>} : vector<8x10xf32>, vector<10x30xf32>, vector<8x30xf32> -> vector<8x30xf32>
    %c10 = arith.constant 10 : index
    %c0_53 = arith.constant 0 : index
    %147 = vector.load %arg2[%c10, %c0_53] : memref<24x128xf32, #tpu.memory_space<vmem>>, vector<1x30xf32>
    %c11 = arith.constant 11 : index
    %c0_54 = arith.constant 0 : index
    %148 = vector.load %arg2[%c11, %c0_54] : memref<24x128xf32, #tpu.memory_space<vmem>>, vector<1x30xf32>
    %cst_55 = arith.constant dense<0.000000e+00> : vector<30xf32>
    %149 = vector.multi_reduction <add>, %146, %cst_55 [0] : vector<8x30xf32> to vector<30xf32>
    %150 = vector.shape_cast %149 : vector<30xf32> to vector<1x30xf32>
    %cst_56 = arith.constant 8.000000e+00 : f32
    %151 = vector.broadcast %cst_56 : f32 to vector<1x30xf32>
    %152 = arith.divf %150, %151 : vector<1x30xf32>
    %153 = arith.mulf %146, %146 : vector<8x30xf32>
    %cst_57 = arith.constant dense<0.000000e+00> : vector<30xf32>
    %154 = vector.multi_reduction <add>, %153, %cst_57 [0] : vector<8x30xf32> to vector<30xf32>
    %155 = vector.shape_cast %154 : vector<30xf32> to vector<1x30xf32>
    %cst_58 = arith.constant 8.000000e+00 : f32
    %156 = vector.broadcast %cst_58 : f32 to vector<1x30xf32>
    %157 = arith.divf %155, %156 : vector<1x30xf32>
    %158 = arith.mulf %152, %152 : vector<1x30xf32>
    %159 = arith.subf %157, %158 : vector<1x30xf32>
    %cst_59 = arith.constant 0.000000e+00 : f32
    %160 = vector.broadcast %cst_59 : f32 to vector<1x30xf32>
    %161 = arith.maximumf %159, %160 : vector<1x30xf32>
    %cst_60 = arith.constant 9.99999974E-6 : f32
    %162 = vector.broadcast %cst_60 : f32 to vector<1x30xf32>
    %163 = arith.addf %161, %162 : vector<1x30xf32>
    %164 = math.rsqrt %163 : vector<1x30xf32>
    %165 = arith.mulf %147, %164 : vector<1x30xf32>
    %166 = vector.broadcast %165 : vector<1x30xf32> to vector<8x30xf32>
    %167 = arith.mulf %146, %166 : vector<8x30xf32>
    %168 = arith.mulf %152, %165 : vector<1x30xf32>
    %169 = arith.subf %148, %168 : vector<1x30xf32>
    %170 = vector.broadcast %169 : vector<1x30xf32> to vector<8x30xf32>
    %171 = arith.addf %167, %170 : vector<8x30xf32>
    %172 = math.tanh %171 : vector<8x30xf32>
    %c256 = arith.constant 256 : index
    %c0_61 = arith.constant 0 : index
    %173 = vector.load %arg1[%c256, %c0_61] : memref<368x128xf32, #tpu.memory_space<vmem>>, vector<30x60xf32>
    %cst_62 = arith.constant dense<0.000000e+00> : vector<8x60xf32>
    %174 = tpu.matmul %172, %173, %cst_62 {dimension_numbers = #tpu.dot_dimension_numbers<[1], [0], [0], [1], [0, 0, 1, 1], [], []>} : vector<8x30xf32>, vector<30x60xf32>, vector<8x60xf32> -> vector<8x60xf32>
    %c12 = arith.constant 12 : index
    %c0_63 = arith.constant 0 : index
    %175 = vector.load %arg2[%c12, %c0_63] : memref<24x128xf32, #tpu.memory_space<vmem>>, vector<1x60xf32>
    %c13 = arith.constant 13 : index
    %c0_64 = arith.constant 0 : index
    %176 = vector.load %arg2[%c13, %c0_64] : memref<24x128xf32, #tpu.memory_space<vmem>>, vector<1x60xf32>
    %cst_65 = arith.constant dense<0.000000e+00> : vector<60xf32>
    %177 = vector.multi_reduction <add>, %174, %cst_65 [0] : vector<8x60xf32> to vector<60xf32>
    %178 = vector.shape_cast %177 : vector<60xf32> to vector<1x60xf32>
    %cst_66 = arith.constant 8.000000e+00 : f32
    %179 = vector.broadcast %cst_66 : f32 to vector<1x60xf32>
    %180 = arith.divf %178, %179 : vector<1x60xf32>
    %181 = arith.mulf %174, %174 : vector<8x60xf32>
    %cst_67 = arith.constant dense<0.000000e+00> : vector<60xf32>
    %182 = vector.multi_reduction <add>, %181, %cst_67 [0] : vector<8x60xf32> to vector<60xf32>
    %183 = vector.shape_cast %182 : vector<60xf32> to vector<1x60xf32>
    %cst_68 = arith.constant 8.000000e+00 : f32
    %184 = vector.broadcast %cst_68 : f32 to vector<1x60xf32>
    %185 = arith.divf %183, %184 : vector<1x60xf32>
    %186 = arith.mulf %180, %180 : vector<1x60xf32>
    %187 = arith.subf %185, %186 : vector<1x60xf32>
    %cst_69 = arith.constant 0.000000e+00 : f32
    %188 = vector.broadcast %cst_69 : f32 to vector<1x60xf32>
    %189 = arith.maximumf %187, %188 : vector<1x60xf32>
    %cst_70 = arith.constant 9.99999974E-6 : f32
    %190 = vector.broadcast %cst_70 : f32 to vector<1x60xf32>
    %191 = arith.addf %189, %190 : vector<1x60xf32>
    %192 = math.rsqrt %191 : vector<1x60xf32>
    %193 = arith.mulf %175, %192 : vector<1x60xf32>
    %194 = vector.broadcast %193 : vector<1x60xf32> to vector<8x60xf32>
    %195 = arith.mulf %174, %194 : vector<8x60xf32>
    %196 = arith.mulf %180, %193 : vector<1x60xf32>
    %197 = arith.subf %176, %196 : vector<1x60xf32>
    %198 = vector.broadcast %197 : vector<1x60xf32> to vector<8x60xf32>
    %199 = arith.addf %195, %198 : vector<8x60xf32>
    %200 = math.tanh %199 : vector<8x60xf32>
    %c288 = arith.constant 288 : index
    %c0_71 = arith.constant 0 : index
    %201 = vector.load %arg1[%c288, %c0_71] : memref<368x128xf32, #tpu.memory_space<vmem>>, vector<60x128xf32>
    %cst_72 = arith.constant dense<0.000000e+00> : vector<8x128xf32>
    %202 = tpu.matmul %200, %201, %cst_72 {dimension_numbers = #tpu.dot_dimension_numbers<[1], [0], [0], [1], [0, 0, 1, 1], [], []>} : vector<8x60xf32>, vector<60x128xf32>, vector<8x128xf32> -> vector<8x128xf32>
    %c14 = arith.constant 14 : index
    %c0_73 = arith.constant 0 : index
    %203 = vector.load %arg2[%c14, %c0_73] : memref<24x128xf32, #tpu.memory_space<vmem>>, vector<1x128xf32>
    %c15 = arith.constant 15 : index
    %c0_74 = arith.constant 0 : index
    %204 = vector.load %arg2[%c15, %c0_74] : memref<24x128xf32, #tpu.memory_space<vmem>>, vector<1x128xf32>
    %cst_75 = arith.constant dense<0.000000e+00> : vector<128xf32>
    %205 = vector.multi_reduction <add>, %202, %cst_75 [0] : vector<8x128xf32> to vector<128xf32>
    %206 = vector.shape_cast %205 : vector<128xf32> to vector<1x128xf32>
    %cst_76 = arith.constant 8.000000e+00 : f32
    %207 = vector.broadcast %cst_76 : f32 to vector<1x128xf32>
    %208 = arith.divf %206, %207 : vector<1x128xf32>
    %209 = arith.mulf %202, %202 : vector<8x128xf32>
    %cst_77 = arith.constant dense<0.000000e+00> : vector<128xf32>
    %210 = vector.multi_reduction <add>, %209, %cst_77 [0] : vector<8x128xf32> to vector<128xf32>
    %211 = vector.shape_cast %210 : vector<128xf32> to vector<1x128xf32>
    %cst_78 = arith.constant 8.000000e+00 : f32
    %212 = vector.broadcast %cst_78 : f32 to vector<1x128xf32>
    %213 = arith.divf %211, %212 : vector<1x128xf32>
    %214 = arith.mulf %208, %208 : vector<1x128xf32>
    %215 = arith.subf %213, %214 : vector<1x128xf32>
    %cst_79 = arith.constant 0.000000e+00 : f32
    %216 = vector.broadcast %cst_79 : f32 to vector<1x128xf32>
    %217 = arith.maximumf %215, %216 : vector<1x128xf32>
    %cst_80 = arith.constant 9.99999974E-6 : f32
    %218 = vector.broadcast %cst_80 : f32 to vector<1x128xf32>
    %219 = arith.addf %217, %218 : vector<1x128xf32>
    %220 = math.rsqrt %219 : vector<1x128xf32>
    %221 = arith.mulf %203, %220 : vector<1x128xf32>
    %222 = vector.broadcast %221 : vector<1x128xf32> to vector<8x128xf32>
    %223 = arith.mulf %202, %222 : vector<8x128xf32>
    %224 = arith.mulf %208, %221 : vector<1x128xf32>
    %225 = arith.subf %204, %224 : vector<1x128xf32>
    %226 = vector.broadcast %225 : vector<1x128xf32> to vector<8x128xf32>
    %227 = arith.addf %223, %226 : vector<8x128xf32>
    %228 = arith.mulf %0, %227 : vector<8x128xf32>
    %cst_81 = arith.constant dense<0.000000e+00> : vector<8xf32>
    %229 = vector.multi_reduction <add>, %228, %cst_81 [1] : vector<8x128xf32> to vector<8xf32>
    %230 = vector.shape_cast %229 : vector<8xf32> to vector<8x1xf32>
    %231 = arith.mulf %0, %0 : vector<8x128xf32>
    %cst_82 = arith.constant dense<0.000000e+00> : vector<8xf32>
    %232 = vector.multi_reduction <add>, %231, %cst_82 [1] : vector<8x128xf32> to vector<8xf32>
    %233 = vector.shape_cast %232 : vector<8xf32> to vector<8x1xf32>
    %234 = math.sqrt %233 : vector<8x1xf32>
    %235 = arith.mulf %227, %227 : vector<8x128xf32>
    %cst_83 = arith.constant dense<0.000000e+00> : vector<8xf32>
    %236 = vector.multi_reduction <add>, %235, %cst_83 [1] : vector<8x128xf32> to vector<8xf32>
    %237 = vector.shape_cast %236 : vector<8xf32> to vector<8x1xf32>
    %238 = math.sqrt %237 : vector<8x1xf32>
    %cst_84 = arith.constant 9.99999993E-9 : f32
    %239 = vector.broadcast %cst_84 : f32 to vector<8x1xf32>
    %240 = arith.maximumf %234, %239 : vector<8x1xf32>
    %cst_85 = arith.constant 9.99999993E-9 : f32
    %241 = vector.broadcast %cst_85 : f32 to vector<8x1xf32>
    %242 = arith.maximumf %238, %241 : vector<8x1xf32>
    %243 = arith.mulf %240, %242 : vector<8x1xf32>
    %244 = arith.divf %230, %243 : vector<8x1xf32>
    %245 = arith.subf %0, %227 : vector<8x128xf32>
    %246 = arith.mulf %245, %245 : vector<8x128xf32>
    %cst_86 = arith.constant dense<0.000000e+00> : vector<8xf32>
    %247 = vector.multi_reduction <add>, %246, %cst_86 [1] : vector<8x128xf32> to vector<8xf32>
    %248 = vector.shape_cast %247 : vector<8xf32> to vector<8x1xf32>
    %249 = math.sqrt %248 : vector<8x1xf32>
    %250 = arith.divf %249, %234 : vector<8x1xf32>
    %251 = tpu.concatenate %114, %244, %250 in 1 : vector<8x1xf32>, vector<8x1xf32>, vector<8x1xf32> -> vector<8x3xf32>
    %c352 = arith.constant 352 : index
    %c0_87 = arith.constant 0 : index
    %252 = vector.load %arg1[%c352, %c0_87] : memref<368x128xf32, #tpu.memory_space<vmem>>, vector<3x10xf32>
    %c16 = arith.constant 16 : index
    %c0_88 = arith.constant 0 : index
    %253 = vector.load %arg2[%c16, %c0_88] : memref<24x128xf32, #tpu.memory_space<vmem>>, vector<1x10xf32>
    %254 = vector.extract_strided_slice %251 {offsets = [0, 0], sizes = [8, 1], strides = [1, 1]} : vector<8x3xf32> to vector<8x1xf32>
    %255 = vector.extract_strided_slice %252 {offsets = [0, 0], sizes = [1, 10], strides = [1, 1]} : vector<3x10xf32> to vector<1x10xf32>
    %256 = vector.broadcast %254 : vector<8x1xf32> to vector<8x10xf32>
    %257 = vector.broadcast %255 : vector<1x10xf32> to vector<8x10xf32>
    %258 = arith.mulf %256, %257 : vector<8x10xf32>
    %259 = vector.extract_strided_slice %251 {offsets = [0, 1], sizes = [8, 1], strides = [1, 1]} : vector<8x3xf32> to vector<8x1xf32>
    %260 = vector.extract_strided_slice %252 {offsets = [1, 0], sizes = [1, 10], strides = [1, 1]} : vector<3x10xf32> to vector<1x10xf32>
    %261 = vector.broadcast %259 : vector<8x1xf32> to vector<8x10xf32>
    %262 = vector.broadcast %260 : vector<1x10xf32> to vector<8x10xf32>
    %263 = arith.mulf %261, %262 : vector<8x10xf32>
    %264 = arith.addf %258, %263 : vector<8x10xf32>
    %265 = vector.extract_strided_slice %251 {offsets = [0, 2], sizes = [8, 1], strides = [1, 1]} : vector<8x3xf32> to vector<8x1xf32>
    %266 = vector.extract_strided_slice %252 {offsets = [2, 0], sizes = [1, 10], strides = [1, 1]} : vector<3x10xf32> to vector<1x10xf32>
    %267 = vector.broadcast %265 : vector<8x1xf32> to vector<8x10xf32>
    %268 = vector.broadcast %266 : vector<1x10xf32> to vector<8x10xf32>
    %269 = arith.mulf %267, %268 : vector<8x10xf32>
    %270 = arith.addf %264, %269 : vector<8x10xf32>
    %271 = vector.broadcast %253 : vector<1x10xf32> to vector<8x10xf32>
    %272 = arith.addf %270, %271 : vector<8x10xf32>
    %273 = math.tanh %272 : vector<8x10xf32>
    %c360 = arith.constant 360 : index
    %c0_89 = arith.constant 0 : index
    %274 = vector.load %arg1[%c360, %c0_89] : memref<368x128xf32, #tpu.memory_space<vmem>>, vector<2x10xf32>
    %c17 = arith.constant 17 : index
    %c0_90 = arith.constant 0 : index
    %275 = vector.load %arg2[%c17, %c0_90] : memref<24x128xf32, #tpu.memory_space<vmem>>, vector<1x2xf32>
    %276 = vector.extract_strided_slice %274 {offsets = [0, 0], sizes = [1, 10], strides = [1, 1]} : vector<2x10xf32> to vector<1x10xf32>
    %277 = vector.broadcast %276 : vector<1x10xf32> to vector<8x10xf32>
    %278 = arith.mulf %273, %277 : vector<8x10xf32>
    %cst_91 = arith.constant dense<0.000000e+00> : vector<8xf32>
    %279 = vector.multi_reduction <add>, %278, %cst_91 [1] : vector<8x10xf32> to vector<8xf32>
    %280 = vector.shape_cast %279 : vector<8xf32> to vector<8x1xf32>
    %281 = vector.extract_strided_slice %274 {offsets = [1, 0], sizes = [1, 10], strides = [1, 1]} : vector<2x10xf32> to vector<1x10xf32>
    %282 = vector.broadcast %281 : vector<1x10xf32> to vector<8x10xf32>
    %283 = arith.mulf %273, %282 : vector<8x10xf32>
    %cst_92 = arith.constant dense<0.000000e+00> : vector<8xf32>
    %284 = vector.multi_reduction <add>, %283, %cst_92 [1] : vector<8x10xf32> to vector<8xf32>
    %285 = vector.shape_cast %284 : vector<8xf32> to vector<8x1xf32>
    %286 = tpu.concatenate %280, %285 in 1 : vector<8x1xf32>, vector<8x1xf32> -> vector<8x2xf32>
    %287 = vector.broadcast %275 : vector<1x2xf32> to vector<8x2xf32>
    %288 = arith.addf %286, %287 : vector<8x2xf32>
    %cst_93 = arith.constant dense<0xFF800000> : vector<2xf32>
    %289 = vector.multi_reduction <maximumf>, %288, %cst_93 [0] : vector<8x2xf32> to vector<2xf32>
    %290 = vector.shape_cast %289 : vector<2xf32> to vector<1x2xf32>
    %291 = vector.broadcast %290 : vector<1x2xf32> to vector<8x2xf32>
    %292 = arith.subf %288, %291 : vector<8x2xf32>
    %293 = math.exp %292 : vector<8x2xf32>
    %cst_94 = arith.constant dense<0.000000e+00> : vector<2xf32>
    %294 = vector.multi_reduction <add>, %293, %cst_94 [0] : vector<8x2xf32> to vector<2xf32>
    %295 = vector.shape_cast %294 : vector<2xf32> to vector<1x2xf32>
    %296 = vector.broadcast %295 : vector<1x2xf32> to vector<8x2xf32>
    %297 = arith.divf %293, %296 : vector<8x2xf32>
    %cst_95 = arith.constant dense<0.000000e+00> : vector<2xf32>
    %298 = vector.multi_reduction <add>, %297, %cst_95 [0] : vector<8x2xf32> to vector<2xf32>
    %299 = vector.shape_cast %298 : vector<2xf32> to vector<1x2xf32>
    %cst_96 = arith.constant 8.000000e+00 : f32
    %300 = vector.broadcast %cst_96 : f32 to vector<1x2xf32>
    %301 = arith.divf %299, %300 : vector<1x2xf32>
    %302 = vector.extract_strided_slice %297 {offsets = [0, 0], sizes = [8, 1], strides = [1, 1]} : vector<8x2xf32> to vector<8x1xf32>
    %303 = vector.extract_strided_slice %299 {offsets = [0, 0], sizes = [1, 1], strides = [1, 1]} : vector<1x2xf32> to vector<1x1xf32>
    %304 = vector.broadcast %302 : vector<8x1xf32> to vector<8x3xf32>
    %305 = arith.mulf %304, %251 : vector<8x3xf32>
    %cst_97 = arith.constant dense<0.000000e+00> : vector<3xf32>
    %306 = vector.multi_reduction <add>, %305, %cst_97 [0] : vector<8x3xf32> to vector<3xf32>
    %307 = vector.shape_cast %306 : vector<3xf32> to vector<1x3xf32>
    %308 = vector.broadcast %303 : vector<1x1xf32> to vector<1x3xf32>
    %309 = arith.divf %307, %308 : vector<1x3xf32>
    %310 = vector.broadcast %309 : vector<1x3xf32> to vector<8x3xf32>
    %311 = arith.subf %251, %310 : vector<8x3xf32>
    %312 = vector.extract_strided_slice %311 {offsets = [0, 0], sizes = [8, 1], strides = [1, 1]} : vector<8x3xf32> to vector<8x1xf32>
    %313 = vector.extract_strided_slice %311 {offsets = [0, 0], sizes = [8, 1], strides = [1, 1]} : vector<8x3xf32> to vector<8x1xf32>
    %314 = arith.mulf %312, %313 : vector<8x1xf32>
    %315 = vector.extract_strided_slice %311 {offsets = [0, 0], sizes = [8, 1], strides = [1, 1]} : vector<8x3xf32> to vector<8x1xf32>
    %316 = vector.extract_strided_slice %311 {offsets = [0, 1], sizes = [8, 1], strides = [1, 1]} : vector<8x3xf32> to vector<8x1xf32>
    %317 = arith.mulf %315, %316 : vector<8x1xf32>
    %318 = vector.extract_strided_slice %311 {offsets = [0, 0], sizes = [8, 1], strides = [1, 1]} : vector<8x3xf32> to vector<8x1xf32>
    %319 = vector.extract_strided_slice %311 {offsets = [0, 2], sizes = [8, 1], strides = [1, 1]} : vector<8x3xf32> to vector<8x1xf32>
    %320 = arith.mulf %318, %319 : vector<8x1xf32>
    %321 = vector.extract_strided_slice %311 {offsets = [0, 1], sizes = [8, 1], strides = [1, 1]} : vector<8x3xf32> to vector<8x1xf32>
    %322 = vector.extract_strided_slice %311 {offsets = [0, 0], sizes = [8, 1], strides = [1, 1]} : vector<8x3xf32> to vector<8x1xf32>
    %323 = arith.mulf %321, %322 : vector<8x1xf32>
    %324 = vector.extract_strided_slice %311 {offsets = [0, 1], sizes = [8, 1], strides = [1, 1]} : vector<8x3xf32> to vector<8x1xf32>
    %325 = vector.extract_strided_slice %311 {offsets = [0, 1], sizes = [8, 1], strides = [1, 1]} : vector<8x3xf32> to vector<8x1xf32>
    %326 = arith.mulf %324, %325 : vector<8x1xf32>
    %327 = vector.extract_strided_slice %311 {offsets = [0, 1], sizes = [8, 1], strides = [1, 1]} : vector<8x3xf32> to vector<8x1xf32>
    %328 = vector.extract_strided_slice %311 {offsets = [0, 2], sizes = [8, 1], strides = [1, 1]} : vector<8x3xf32> to vector<8x1xf32>
    %329 = arith.mulf %327, %328 : vector<8x1xf32>
    %330 = vector.extract_strided_slice %311 {offsets = [0, 2], sizes = [8, 1], strides = [1, 1]} : vector<8x3xf32> to vector<8x1xf32>
    %331 = vector.extract_strided_slice %311 {offsets = [0, 0], sizes = [8, 1], strides = [1, 1]} : vector<8x3xf32> to vector<8x1xf32>
    %332 = arith.mulf %330, %331 : vector<8x1xf32>
    %333 = vector.extract_strided_slice %311 {offsets = [0, 2], sizes = [8, 1], strides = [1, 1]} : vector<8x3xf32> to vector<8x1xf32>
    %334 = vector.extract_strided_slice %311 {offsets = [0, 1], sizes = [8, 1], strides = [1, 1]} : vector<8x3xf32> to vector<8x1xf32>
    %335 = arith.mulf %333, %334 : vector<8x1xf32>
    %336 = vector.extract_strided_slice %311 {offsets = [0, 2], sizes = [8, 1], strides = [1, 1]} : vector<8x3xf32> to vector<8x1xf32>
    %337 = vector.extract_strided_slice %311 {offsets = [0, 2], sizes = [8, 1], strides = [1, 1]} : vector<8x3xf32> to vector<8x1xf32>
    %338 = arith.mulf %336, %337 : vector<8x1xf32>
    %339 = tpu.concatenate %314, %317, %320, %323, %326, %329, %332, %335, %338 in 1 : vector<8x1xf32>, vector<8x1xf32>, vector<8x1xf32>, vector<8x1xf32>, vector<8x1xf32>, vector<8x1xf32>, vector<8x1xf32>, vector<8x1xf32>, vector<8x1xf32> -> vector<8x9xf32>
    %340 = vector.broadcast %302 : vector<8x1xf32> to vector<8x9xf32>
    %341 = arith.mulf %340, %339 : vector<8x9xf32>
    %cst_98 = arith.constant dense<0.000000e+00> : vector<9xf32>
    %342 = vector.multi_reduction <add>, %341, %cst_98 [0] : vector<8x9xf32> to vector<9xf32>
    %343 = vector.shape_cast %342 : vector<9xf32> to vector<1x9xf32>
    %344 = vector.broadcast %303 : vector<1x1xf32> to vector<1x9xf32>
    %345 = arith.divf %343, %344 : vector<1x9xf32>
    %346 = vector.extract_strided_slice %297 {offsets = [0, 1], sizes = [8, 1], strides = [1, 1]} : vector<8x2xf32> to vector<8x1xf32>
    %347 = vector.extract_strided_slice %299 {offsets = [0, 1], sizes = [1, 1], strides = [1, 1]} : vector<1x2xf32> to vector<1x1xf32>
    %348 = vector.broadcast %346 : vector<8x1xf32> to vector<8x3xf32>
    %349 = arith.mulf %348, %251 : vector<8x3xf32>
    %cst_99 = arith.constant dense<0.000000e+00> : vector<3xf32>
    %350 = vector.multi_reduction <add>, %349, %cst_99 [0] : vector<8x3xf32> to vector<3xf32>
    %351 = vector.shape_cast %350 : vector<3xf32> to vector<1x3xf32>
    %352 = vector.broadcast %347 : vector<1x1xf32> to vector<1x3xf32>
    %353 = arith.divf %351, %352 : vector<1x3xf32>
    %354 = vector.broadcast %353 : vector<1x3xf32> to vector<8x3xf32>
    %355 = arith.subf %251, %354 : vector<8x3xf32>
    %356 = vector.extract_strided_slice %355 {offsets = [0, 0], sizes = [8, 1], strides = [1, 1]} : vector<8x3xf32> to vector<8x1xf32>
    %357 = vector.extract_strided_slice %355 {offsets = [0, 0], sizes = [8, 1], strides = [1, 1]} : vector<8x3xf32> to vector<8x1xf32>
    %358 = arith.mulf %356, %357 : vector<8x1xf32>
    %359 = vector.extract_strided_slice %355 {offsets = [0, 0], sizes = [8, 1], strides = [1, 1]} : vector<8x3xf32> to vector<8x1xf32>
    %360 = vector.extract_strided_slice %355 {offsets = [0, 1], sizes = [8, 1], strides = [1, 1]} : vector<8x3xf32> to vector<8x1xf32>
    %361 = arith.mulf %359, %360 : vector<8x1xf32>
    %362 = vector.extract_strided_slice %355 {offsets = [0, 0], sizes = [8, 1], strides = [1, 1]} : vector<8x3xf32> to vector<8x1xf32>
    %363 = vector.extract_strided_slice %355 {offsets = [0, 2], sizes = [8, 1], strides = [1, 1]} : vector<8x3xf32> to vector<8x1xf32>
    %364 = arith.mulf %362, %363 : vector<8x1xf32>
    %365 = vector.extract_strided_slice %355 {offsets = [0, 1], sizes = [8, 1], strides = [1, 1]} : vector<8x3xf32> to vector<8x1xf32>
    %366 = vector.extract_strided_slice %355 {offsets = [0, 0], sizes = [8, 1], strides = [1, 1]} : vector<8x3xf32> to vector<8x1xf32>
    %367 = arith.mulf %365, %366 : vector<8x1xf32>
    %368 = vector.extract_strided_slice %355 {offsets = [0, 1], sizes = [8, 1], strides = [1, 1]} : vector<8x3xf32> to vector<8x1xf32>
    %369 = vector.extract_strided_slice %355 {offsets = [0, 1], sizes = [8, 1], strides = [1, 1]} : vector<8x3xf32> to vector<8x1xf32>
    %370 = arith.mulf %368, %369 : vector<8x1xf32>
    %371 = vector.extract_strided_slice %355 {offsets = [0, 1], sizes = [8, 1], strides = [1, 1]} : vector<8x3xf32> to vector<8x1xf32>
    %372 = vector.extract_strided_slice %355 {offsets = [0, 2], sizes = [8, 1], strides = [1, 1]} : vector<8x3xf32> to vector<8x1xf32>
    %373 = arith.mulf %371, %372 : vector<8x1xf32>
    %374 = vector.extract_strided_slice %355 {offsets = [0, 2], sizes = [8, 1], strides = [1, 1]} : vector<8x3xf32> to vector<8x1xf32>
    %375 = vector.extract_strided_slice %355 {offsets = [0, 0], sizes = [8, 1], strides = [1, 1]} : vector<8x3xf32> to vector<8x1xf32>
    %376 = arith.mulf %374, %375 : vector<8x1xf32>
    %377 = vector.extract_strided_slice %355 {offsets = [0, 2], sizes = [8, 1], strides = [1, 1]} : vector<8x3xf32> to vector<8x1xf32>
    %378 = vector.extract_strided_slice %355 {offsets = [0, 1], sizes = [8, 1], strides = [1, 1]} : vector<8x3xf32> to vector<8x1xf32>
    %379 = arith.mulf %377, %378 : vector<8x1xf32>
    %380 = vector.extract_strided_slice %355 {offsets = [0, 2], sizes = [8, 1], strides = [1, 1]} : vector<8x3xf32> to vector<8x1xf32>
    %381 = vector.extract_strided_slice %355 {offsets = [0, 2], sizes = [8, 1], strides = [1, 1]} : vector<8x3xf32> to vector<8x1xf32>
    %382 = arith.mulf %380, %381 : vector<8x1xf32>
    %383 = tpu.concatenate %358, %361, %364, %367, %370, %373, %376, %379, %382 in 1 : vector<8x1xf32>, vector<8x1xf32>, vector<8x1xf32>, vector<8x1xf32>, vector<8x1xf32>, vector<8x1xf32>, vector<8x1xf32>, vector<8x1xf32>, vector<8x1xf32> -> vector<8x9xf32>
    %384 = vector.broadcast %346 : vector<8x1xf32> to vector<8x9xf32>
    %385 = arith.mulf %384, %383 : vector<8x9xf32>
    %cst_100 = arith.constant dense<0.000000e+00> : vector<9xf32>
    %386 = vector.multi_reduction <add>, %385, %cst_100 [0] : vector<8x9xf32> to vector<9xf32>
    %387 = vector.shape_cast %386 : vector<9xf32> to vector<1x9xf32>
    %388 = vector.broadcast %347 : vector<1x1xf32> to vector<1x9xf32>
    %389 = arith.divf %387, %388 : vector<1x9xf32>
    %390 = tpu.concatenate %309, %353 in 0 : vector<1x3xf32>, vector<1x3xf32> -> vector<2x3xf32>
    %391 = tpu.concatenate %345, %389 in 0 : vector<1x9xf32>, vector<1x9xf32> -> vector<2x9xf32>
    %cst_101 = arith.constant 0.000000e+00 : f32
    %392 = vector.broadcast %cst_101 : f32 to vector<6x3xf32>
    %393 = tpu.concatenate %390, %392 in 0 : vector<2x3xf32>, vector<6x3xf32> -> vector<8x3xf32>
    %cst_102 = arith.constant 0.000000e+00 : f32
    %394 = vector.broadcast %cst_102 : f32 to vector<6x9xf32>
    %395 = tpu.concatenate %391, %394 in 0 : vector<2x9xf32>, vector<6x9xf32> -> vector<8x9xf32>
    %cst_103 = arith.constant 0.000000e+00 : f32
    %396 = vector.broadcast %cst_103 : f32 to vector<7x2xf32>
    %397 = tpu.concatenate %301, %396 in 0 : vector<1x2xf32>, vector<7x2xf32> -> vector<8x2xf32>
    %cst_104 = arith.constant 0.000000e+00 : f32
    %398 = vector.broadcast %cst_104 : f32 to vector<8x109xf32>
    %399 = tpu.concatenate %251, %297, %393, %395, %397, %398 in 1 : vector<8x3xf32>, vector<8x2xf32>, vector<8x3xf32>, vector<8x9xf32>, vector<8x2xf32>, vector<8x109xf32> -> vector<8x128xf32>
    %400 = tpu.concatenate %227, %399 in 1 : vector<8x128xf32>, vector<8x128xf32> -> vector<8x256xf32>
    %c0_105 = arith.constant 0 : index
    %c0_106 = arith.constant 0 : index
    %401 = vector.load %arg3[%c0_105, %c0_106] : memref<8x256xf32, #tpu.memory_space<vmem>>, vector<8x256xf32>
    tpu.vector_store %arg3[%c0_105, %c0_106], %400 {strides = array<i32>} : memref<8x256xf32, #tpu.memory_space<vmem>>, vector<8x256xf32>,
    return
  }
}

</mosaic_0001>

<bundles_post_ra>
// kernel: _dagmm_forward_impl.1
= control target key start
LH: loop header
LB: loop body
LE: loop exit
PB: predicated region body
PF: predicated region fallthrough
CT: control target
= control target key end

     0   :  { %v1389_v0 = vmov 0.0   ;;  %vm1390_vm0 = vmmov 0   ;;  %vm152_vm1 = vcmask 1043456   ;;  %vm103_vm2 = vcmask 490496   ;;  %s1396_s5 = smov 126   ;;  %s1397_s6 = smov 1   ;;  %s1818_s1 = inlined_call_operand.vmem [shape: f32[368,128], index: 1, kind: input, shape index: {}]   ;;  %s1819_s0 = inlined_call_operand.vmem [shape: f32[8,128], index: 0, kind: input, shape index: {}]   ;;  %s1820_s2 = inlined_call_operand.vmem [shape: f32[24,128], index: 2, kind: input, shape index: {}]   ;;  %s1821_s3 = inlined_call_operand.vmem [shape: f32[8,256], index: 3, kind: output, shape index: {}]  }
   0x1   :  { %1217 = vmatprep.subr.mxu0 %v1389_v0  ;;  %v30_v1 = vld [vmem:[%s1818_s1 + $0x78] sm:$0xff]  ;;  %v29_v2 = vld [vmem:[%s1818_s1 + $0x70] sm:$0xff]  ;;  %1249 = vmatprep.mubr.msk.f32.mxu0 %vm1390_vm0, %v1389_v0  ;;  %v28_v3 = vld [vmem:[%s1818_s1 + $0x68] sm:$0xff]  ;;  %v128_v49 = vlaneseq  ;;  %vm272_vm3 = vcmask 1045504   ;;  %vm228_vm4 = vcmask 244736   ;;  %vm348_vm5 = vcmask 80896  }
   0x2   :  { %1218 = vmatpush3.msra.mxu0 %v30_v1  ;;  %1252 = vmatprep.subr.mxu1 %v1389_v0  ;;  %v27_v4 = vld [vmem:[%s1818_s1 + $0x60] sm:$0xff]  ;;  %v26_v5 = vld [vmem:[%s1818_s1 + $0x58] sm:$0xff]  ;;  %v25_v6 = vld [vmem:[%s1818_s1 + $0x50] sm:$0xff]  ;;  %vm483_vm6 = vcmask 1041408   ;;  %vm873_vm13 = vcmask 7168   ;;  %vm875_vm14 = vcmask 15360  }
   0x3   :  { %1219 = vmatprep.subr.mxu0 %v1389_v0  ;;  %1268 = vmatprep.mubr.msk.f32.mxu1 %vm1390_vm0, %v1389_v0  ;;  %v24_v7 = vld [vmem:[%s1818_s1 + $0x48] sm:$0xff]  ;;  %v23_v8 = vld [vmem:[%s1818_s1 + $0x40] sm:$0xff]  ;;  %v22_v9 = vld [vmem:[%s1818_s1 + $0x38] sm:$0xff]  ;;  %v1537_v50 = vshrl.u32 %v128_v49, 7  ;;  %vm972_vm15 = vcmask 23552   ;;  %s1398_s7 = smov 2  }
   0x4   :  { %1220 = vmatpush3.msra.mxu0 %v29_v2  ;;  %v21_v10 = vld [vmem:[%s1818_s1 + $0x30] sm:$0xff]  ;;  %v20_v11 = vld [vmem:[%s1818_s1 + $0x28] sm:$0xff]  ;;  %v19_v12 = vld [vmem:[%s1818_s1 + $0x20] sm:$0xff]  ;;  %s1399_s8 = smov 4   ;;  %s1400_s9 = smov 6  }
   0x5   :  { %1221 = vmatprep.subr.mxu0 %v1389_v0  ;;  %v18_v13 = vld [vmem:[%s1818_s1 + $0x18] sm:$0xff]  ;;  %v17_v14 = vld [vmem:[%s1818_s1 + $0x10] sm:$0xff]  ;;  %v16_v15 = vld [vmem:[%s1818_s1 + $0x8] sm:$0xff]  ;;  %v1543_v52 = vsub.s32 0, %v1537_v50  ;;  %s1401_s10 = smov 5   ;;  %s1402_s11 = smov 17  }
   0x6   :  { %1222 = vmatpush3.msra.mxu0 %v28_v3  ;;  %v15_v16 = vld [vmem:[%s1818_s1] sm:$0xff]  ;;  %v148_v18 = vld [vmem:[%s1818_s1 + $0xb8] sm:$0xf]  ;;  %v147_v19 = vld [vmem:[%s1818_s1 + $0xb0] sm:$0xff]  ;;  %s1403_s12 = smov 8  }
   0x7   :  { %1223 = vmatprep.subr.mxu0 %v1389_v0  ;;  %v1495_v17 = vld [vmem:[%s1819_s0] sm:$0xff]  ;;  %1253 = vmatpush3.msk.msra.mxu1 %vm152_vm1, %v148_v18  ;;  %v146_v20 = vld [vmem:[%s1818_s1 + $0xa8] sm:$0xff]  ;;  %v144_v22 = vld [vmem:[%s1818_s1 + $0x98] sm:$0xff] }
   0x8   :  { %1224 = vmatpush3.msra.mxu0 %v27_v4  ;;  %1254 = vmatprep.subr.mxu1 %v1389_v0  ;;  %v145_v21 = vld [vmem:[%s1818_s1 + $0xa0] sm:$0xff]  ;;  %v143_v23 = vld [vmem:[%s1818_s1 + $0x90] sm:$0xff]  ;;  %v142_v24 = vld [vmem:[%s1818_s1 + $0x88] sm:$0xff] }
   0x9   :  { %1225 = vmatprep.subr.mxu0 %v1389_v0  ;;  %1255 = vmatpush3.msra.mxu1 %v147_v19  ;;  %v141_v25 = vld [vmem:[%s1818_s1 + $0x80] sm:$0xff]  ;;  %v268_v63 = vld [vmem:[%s1818_s1 + $0xd8] sm:$0x3f]  ;;  %v267_v1 = vld [vmem:[%s1818_s1 + $0xd0] sm:$0xff] }
   0xa   :  { %1226 = vmatpush3.msra.mxu0 %v26_v5  ;;  %1256 = vmatprep.subr.mxu1 %v1389_v0  ;;  %v101_v51 = vld [vmem:[%s1820_s2] sm:$0x1]  ;;  %v102_v55 = vld [vmem:[%s1820_s2 + $0x1] sm:$0x1]  ;;  %v266_v2 = vld [vmem:[%s1818_s1 + $0xc8] sm:$0xff] }
   0xb   :  { %1227 = vmatprep.subr.mxu0 %v1389_v0  ;;  %1257 = vmatpush3.msra.mxu1 %v146_v20  ;;  %v265_v3 = vld [vmem:[%s1818_s1 + $0xc0] sm:$0xff] }
   0xc   :  { %1228 = vmatpush3.msra.mxu0 %v25_v6  ;;  %1258 = vmatprep.subr.mxu1 %v1389_v0 }
   0xd   :  { %1229 = vmatprep.subr.mxu0 %v1389_v0  ;;  %1259 = vmatpush3.msra.mxu1 %v145_v21 }
   0xe   :  { %1230 = vmatpush3.msra.mxu0 %v24_v7  ;;  %1260 = vmatprep.subr.mxu1 %v1389_v0 }
   0xf   :  { %1231 = vmatprep.subr.mxu0 %v1389_v0  ;;  %1261 = vmatpush3.msra.mxu1 %v144_v22 }
  0x10   :  { %1232 = vmatpush3.msra.mxu0 %v23_v8  ;;  %1262 = vmatprep.subr.mxu1 %v1389_v0 }
  0x11   :  { %1233 = vmatprep.subr.mxu0 %v1389_v0  ;;  %1263 = vmatpush3.msra.mxu1 %v143_v23 }
  0x12   :  { %1234 = vmatpush3.msra.mxu0 %v22_v9  ;;  %1264 = vmatprep.subr.mxu1 %v1389_v0 }
  0x13   :  { %1235 = vmatprep.subr.mxu0 %v1389_v0  ;;  %1265 = vmatpush3.msra.mxu1 %v142_v24 }
  0x14   :  { %1236 = vmatpush3.msra.mxu0 %v21_v10  ;;  %1266 = vmatprep.subr.mxu1 %v1389_v0 }
  0x15   :  { %1237 = vmatprep.subr.mxu0 %v1389_v0  ;;  %1267 = vmatpush3.msra.mxu1 %v141_v25 }
  0x16   :  { %1238 = vmatpush3.msra.mxu0 %v20_v11  ;;  %1271 = vmatprep.subr.mxu1 %v1389_v0 }
  0x17   :  { %1239 = vmatprep.subr.mxu0 %v1389_v0 }
  0x18   :  { %1240 = vmatpush3.msra.mxu0 %v19_v12 }
  0x19   :  { %1241 = vmatprep.subr.mxu0 %v1389_v0 }
  0x1a   :  { %1242 = vmatpush3.msra.mxu0 %v18_v13 }
  0x1b   :  { %1243 = vmatprep.subr.mxu0 %v1389_v0 }
  0x1c   :  { %1244 = vmatpush3.msra.mxu0 %v17_v14 }
  0x1d   :  { %1245 = vmatprep.subr.mxu0 %v1389_v0 }
  0x1e   :  { %1246 = vmatpush3.msra.mxu0 %v16_v15 }
  0x1f   :  { %1247 = vmatprep.subr.mxu0 %v1389_v0 }
  0x20   :  { %1248 = vmatpush3.msra.mxu0 %v15_v16 }
  0x21   :  { %1250 = vmatmul.mubr.f32.vlgmr.msra.gmra.mxu0 %v1495_v17  ;;  %1300 = vmatprep.subr.mxu0 %v1389_v0 }
  0x22   :  { %1316 = vmatprep.mubr.msk.f32.mxu0 %vm1390_vm0, %v1389_v0 }
  0xe1   :  { %v97_v26 = vpop.f32.mrf.mxu0 }
  0xe2   :  { %v104_v27 = vsel %vm103_vm2, %v97_v26, 0.0  ;;  %v113_v28 = vmul.f32 %v97_v26, %v97_v26 }
  0xe3   :  { %v105_v29 = vrot.slane %v104_v27, 4  ;;  %v1251_v30 = vpop.f32.mrf.mxu0 }
  0xe4   :  { %v114_v31 = vsel %vm103_vm2, %v113_v28, 0.0  ;;  %v226_v28 = vld [vmem:[%s1820_s2 + $0x2] sm:$0x1] }
  0xe5   :  { %v106_v32 = vadd.f32 %v105_v29, %v104_v27  ;;  %v115_v33 = vrot.slane %v114_v31, 4 }
  0xe7   :  { %v107_v34 = vrot.slane %v106_v32, 2  ;;  %v116_v35 = vadd.f32 %v115_v33, %v114_v31  ;;  %v227_v31 = vld [vmem:[%s1820_s2 + $0x3] sm:$0x1] }
  0xe9   :  { %v108_v36 = vadd.f32 %v107_v34, %v106_v32  ;;  %v117_v37 = vrot.slane %v116_v35, 2 }
  0xeb   :  { %v109_v38 = vrot.slane %v108_v36, 1  ;;  %v118_v39 = vadd.f32 %v117_v37, %v116_v35 }
  0xed   :  { %v110_v40 = vadd.f32 %v109_v38, %v108_v36  ;;  %v119_v41 = vrot.slane %v118_v39, 1 }
  0xef   :  { %v112_v42 = vmul.f32 0.125, %v110_v40  ;;  %v120_v43 = vadd.f32 %v119_v41, %v118_v39 }
  0xf1   :  { %v121_v44 = vmul.f32 0.125, %v120_v43  ;;  %v122_v45 = vmul.f32 %v112_v42, %v112_v42 }
  0xf3   :  { %v123_v46 = vsub.f32 %v121_v44, %v122_v45 }
  0xf5   :  { %v124_v47 = vmax.f32 %v123_v46, 0.0 }
  0xf7   :  { %v125_v48 = vadd.f32 1e-05, %v124_v47 }
  0xf9   :  { %1341 = vrsqrt.f32 %v125_v48 }
 0x106   :  { %v1342_v53 = vpop.eup %1341 }
 0x107   :  { %v127_v54 = vmul.f32 %v1342_v53, %v101_v51 }
 0x109   :  { %v131_v56 = vrot.slane %v127_v54, %v1543_v52  ;;  %v133_v57 = vmul.f32 %v127_v54, %v112_v42 }
 0x10b   :  { %v134_v58 = vsub.f32 %v102_v55, %v133_v57  ;;  %v132_v59 = vmul.f32 %v131_v56, %v97_v26 }
 0x10d   :  { %v138_v60 = vrot.slane %v134_v58, %v1543_v52 }
 0x10f   :  { %v139_v61 = vadd.f32 %v138_v60, %v132_v59 }
 0x111   :  { %1343 = vtanh.f32 %v139_v61 }
 0x11e   :  { %v1344_v62 = vpop.eup %1343 }
 0x11f   :  { %1269 = vmatmul.mubr.msk.f32.vlgmr.msra.gmra.mxu1 %vm103_vm2, %v1344_v62 }
 0x120   :  { %1279 = vmatprep.mubr.msk.f32.mxu1 %vm1390_vm0, %v1389_v0  ;;  %1272 = vmatpush3.msk.msra.mxu1 %vm272_vm3, %v268_v63 }
 0x121   :  { %1273 = vmatprep.subr.mxu1 %v1389_v0 }
 0x122   :  { %1274 = vmatpush3.msra.mxu1 %v267_v1  ;;  %v346_v1 = vld [vmem:[%s1820_s2 + $0x4] sm:$0x1] }
 0x123   :  { %1275 = vmatprep.subr.mxu1 %v1389_v0 }
 0x124   :  { %1276 = vmatpush3.msra.mxu1 %v266_v2 }
 0x125   :  { %1277 = vmatprep.subr.mxu1 %v1389_v0 }
 0x126   :  { %1278 = vmatpush3.msra.mxu1 %v265_v3 }
 0x127   :  { %1282 = vmatprep.subr.mxu1 %v1389_v0 }
 0x1df   :  { %v222_v4 = vpop.f32.mrf.mxu1 }
 0x1e0   :  { %v229_v5 = vsel %vm228_vm4, %v222_v4, 0.0  ;;  %v237_v6 = vmul.f32 %v222_v4, %v222_v4 }
 0x1e1   :  { %v230_v7 = vrot.slane %v229_v5, 4  ;;  %v1270_v8 = vpop.f32.mrf.mxu1 }
 0x1e2   :  { %v238_v9 = vsel %vm228_vm4, %v237_v6, 0.0 }
 0x1e3   :  { %v231_v10 = vadd.f32 %v230_v7, %v229_v5  ;;  %v239_v11 = vrot.slane %v238_v9, 4 }
 0x1e5   :  { %v232_v12 = vrot.slane %v231_v10, 2  ;;  %v240_v13 = vadd.f32 %v239_v11, %v238_v9  ;;  %v1159_v11 = vld [vmem:[%s1818_s1 + $0xe0] ss:$0 sm:$0xff] }
 0x1e7   :  { %v233_v14 = vadd.f32 %v232_v12, %v231_v10  ;;  %v241_v15 = vrot.slane %v240_v13, 2 }
 0x1e9   :  { %v234_v16 = vrot.slane %v233_v14, 1  ;;  %v242_v18 = vadd.f32 %v241_v15, %v240_v13  ;;  %v1391_v15 = vmov 0  }
 0x1ea   :  { %1334 = vset.pattern.permute.xlu0 %v1391_v15  ;;  %1335 = vset.pattern.permute.xlu1 %v1391_v15 }
 0x1eb   :  { %v235_v19 = vadd.f32 %v234_v16, %v233_v14  ;;  %v243_v20 = vrot.slane %v242_v18, 1 }
 0x1ed   :  { %v236_v21 = vmul.f32 0.125, %v235_v19  ;;  %v244_v22 = vadd.f32 %v243_v20, %v242_v18 }
 0x1ef   :  { %v245_v23 = vmul.f32 0.125, %v244_v22  ;;  %v246_v24 = vmul.f32 %v236_v21, %v236_v21 }
 0x1f1   :  { %v247_v25 = vsub.f32 %v245_v23, %v246_v24 }
 0x1f3   :  { %v248_v26 = vmax.f32 %v247_v25, 0.0 }
 0x1f5   :  { %v249_v27 = vadd.f32 1e-05, %v248_v26 }
 0x1f7   :  { %1345 = vrsqrt.f32 %v249_v27 }
 0x204   :  { %v1346_v29 = vpop.eup %1345 }
 0x205   :  { %v251_v30 = vmul.f32 %v1346_v29, %v226_v28 }
 0x207   :  { %v255_v32 = vrot.slane %v251_v30, %v1543_v52  ;;  %v257_v33 = vmul.f32 %v251_v30, %v236_v21 }
 0x209   :  { %v258_v34 = vsub.f32 %v227_v31, %v257_v33  ;;  %v256_v35 = vmul.f32 %v255_v32, %v222_v4  ;;  %v347_v4 = vld [vmem:[%s1820_s2 + $0x5] sm:$0x1] }
 0x20b   :  { %v262_v36 = vrot.slane %v258_v34, %v1543_v52 }
 0x20d   :  { %v263_v37 = vadd.f32 %v262_v36, %v256_v35 }
 0x20f   :  { %1347 = vtanh.f32 %v263_v37  ;;  %v394_v37 = vld [vmem:[%s1820_s2 + $0x6] sm:$0x1] }
 0x21c   :  { %v1348_v38 = vpop.eup %1347 }
 0x21d   :  { %1280 = vmatmul.mubr.msk.f32.vlgmr.msra.gmra.mxu1 %vm228_vm4, %v1348_v38 }
 0x21e   :  { %1286 = vmatprep.mubr.msk.f32.mxu1 %vm1390_vm0, %v1389_v0 }
 0x2dd   :  { %v342_v39 = vpop.f32.mrf.mxu1 }
 0x2de   :  { %v349_v40 = vsel %vm348_vm5, %v342_v39, 0.0  ;;  %v357_v41 = vmul.f32 %v342_v39, %v342_v39 }
 0x2df   :  { %v350_v42 = vrot.slane %v349_v40, 4  ;;  %v1281_v43 = vpop.f32.mrf.mxu1 }
 0x2e0   :  { %v358_v44 = vsel %vm348_vm5, %v357_v41, 0.0 }
 0x2e1   :  { %v351_v45 = vadd.f32 %v350_v42, %v349_v40  ;;  %v359_v46 = vrot.slane %v358_v44, 4  ;;  %v395_v40 = vld [vmem:[%s1820_s2 + $0x7] sm:$0x1] }
 0x2e3   :  { %v352_v47 = vrot.slane %v351_v45, 2  ;;  %v360_v48 = vadd.f32 %v359_v46, %v358_v44 }
 0x2e5   :  { %v353_v49 = vadd.f32 %v352_v47, %v351_v45  ;;  %v361_v51 = vrot.slane %v360_v48, 2  ;;  %v479_v47 = vld [vmem:[%s1818_s1 + $0xf8] sm:$0x3] }
 0x2e6   :  { %1283 = vmatpush3.msk.msra.mxu1 %vm483_vm6, %v479_v47 }
 0x2e7   :  { %v354_v53 = vrot.slane %v353_v49, 1  ;;  %v362_v54 = vadd.f32 %v361_v51, %v360_v48  ;;  %v478_v48 = vld [vmem:[%s1818_s1 + $0xf0] sm:$0xff]  ;;  %1284 = vmatprep.subr.mxu1 %v1389_v0 }
 0x2e8   :  { %1285 = vmatpush3.msra.mxu1 %v478_v48 }
 0x2e9   :  { %v355_v55 = vadd.f32 %v354_v53, %v353_v49  ;;  %v363_v56 = vrot.slane %v362_v54, 1  ;;  %1289 = vmatprep.subr.mxu1 %v1389_v0  ;;  %v1160_v49 = vld [vmem:[%s1818_s1 + $0xe8] ss:$0 sm:$0xff] }
 0x2eb   :  { %v356_v57 = vmul.f32 0.125, %v355_v55  ;;  %v364_v58 = vadd.f32 %v363_v56, %v362_v54 }
 0x2ed   :  { %v365_v59 = vmul.f32 0.125, %v364_v58  ;;  %v366_v60 = vmul.f32 %v356_v57, %v356_v57 }
 0x2ef   :  { %v367_v61 = vsub.f32 %v365_v59, %v366_v60 }
 0x2f1   :  { %v368_v62 = vmax.f32 %v367_v61, 0.0 }
 0x2f3   :  { %v369_v63 = vadd.f32 1e-05, %v368_v62 }
 0x2f5   :  { %1349 = vrsqrt.f32 %v369_v63 }
 0x302   :  { %v1350_v2 = vpop.eup %1349 }
 0x303   :  { %v371_v3 = vmul.f32 %v1350_v2, %v346_v1 }
 0x305   :  { %v375_v5 = vrot.slane %v371_v3, %v1543_v52  ;;  %v377_v6 = vmul.f32 %v371_v3, %v356_v57 }
 0x307   :  { %v378_v7 = vsub.f32 %v347_v4, %v377_v6  ;;  %v376_v8 = vmul.f32 %v375_v5, %v342_v39 }
 0x309   :  { %v382_v9 = vrot.slane %v378_v7, %v1543_v52 }
 0x30b   :  { %v383_v10 = vadd.f32 %v382_v9, %v376_v8 }
 0x30d   :  { %1351 = vtanh.f32 %v383_v10 }
 0x31a   :  { %v1352_v12 = vpop.eup %1351 }
 0x31b   :  { %v390_v13 = vmul.f32 %v1352_v12, %v1159_v11  ;;  %v440_v12 = vld [vmem:[%s1820_s2 + $0x8] sm:$0x1] }
 0x31d   :  { %v391_v14 = vsel %vm348_vm5, %v390_v13, 0.0 }
 0x31e   :  { %392 = vadd.xlane.f32.xlu0 %v391_v14 }
 0x3a7   :  { %v393_v16 = vpop.xlane.xlu0 %392 }
 0x3a8   :  { %v396_v18 = vrot.slane %v393_v16, 4  ;;  %v403_v19 = vmul.f32 %v393_v16, %v393_v16 }
 0x3aa   :  { %v397_v20 = vadd.f32 %v396_v18, %v393_v16  ;;  %v404_v21 = vrot.slane %v403_v19, 4 }
 0x3ac   :  { %v398_v22 = vrot.slane %v397_v20, 2  ;;  %v405_v23 = vadd.f32 %v404_v21, %v403_v19 }
 0x3ae   :  { %v399_v24 = vadd.f32 %v398_v22, %v397_v20  ;;  %v406_v25 = vrot.slane %v405_v23, 2 }
 0x3b0   :  { %v400_v26 = vrot.slane %v399_v24, 1  ;;  %v407_v27 = vadd.f32 %v406_v25, %v405_v23  ;;  %v598_v25 = vld [vmem:[%s1818_s1 + $0x118] sm:$0x3f] }
 0x3b2   :  { %v401_v28 = vadd.f32 %v400_v26, %v399_v24  ;;  %v408_v29 = vrot.slane %v407_v27, 1  ;;  %v597_v26 = vld [vmem:[%s1818_s1 + $0x110] sm:$0xff] }
 0x3b4   :  { %v402_v30 = vmul.f32 0.125, %v401_v28  ;;  %v409_v31 = vadd.f32 %v408_v29, %v407_v27  ;;  %v596_v27 = vld [vmem:[%s1818_s1 + $0x108] sm:$0xff]  ;;  %v595_v28 = vld [vmem:[%s1818_s1 + $0x100] sm:$0xff] }
 0x3b6   :  { %v410_v32 = vmul.f32 0.125, %v409_v31  ;;  %v411_v33 = vmul.f32 %v402_v30, %v402_v30 }
 0x3b8   :  { %v412_v34 = vsub.f32 %v410_v32, %v411_v33 }
 0x3ba   :  { %v413_v35 = vmax.f32 %v412_v34, 0.0 }
 0x3bc   :  { %v414_v36 = vadd.f32 1e-05, %v413_v35 }
 0x3be   :  { %1353 = vrsqrt.f32 %v414_v36 }
 0x3cb   :  { %v1354_v38 = vpop.eup %1353 }
 0x3cc   :  { %v416_v39 = vmul.f32 %v1354_v38, %v394_v37 }
 0x3ce   :  { %v420_v41 = vrot.slane %v416_v39, %v1543_v52  ;;  %v422_v42 = vmul.f32 %v416_v39, %v402_v30 }
 0x3d0   :  { %v423_v43 = vsub.f32 %v395_v40, %v422_v42  ;;  %v421_v44 = vmul.f32 %v420_v41, %v393_v16  ;;  %v441_v16 = vld [vmem:[%s1820_s2 + $0x9] sm:$0x1] }
 0x3d2   :  { %v427_v45 = vrot.slane %v423_v43, %v1543_v52 }
 0x3d4   :  { %v1607_v46 = vadd.f32 %v427_v45, %v421_v44 }
 0x3d6   :  { %432 = vperm.xlu0 %1334, %v1607_v46  }
 0x451   :  { %v433_v51 = vpop.permute.xlu0 %432 }
 0x452   :  { %v439_v53 = vmul.f32 %v1160_v49, %v433_v51 }
 0x454   :  { %v442_v54 = vsel %vm348_vm5, %v439_v53, 0.0  ;;  %v450_v55 = vmul.f32 %v439_v53, %v439_v53 }
 0x455   :  { %v443_v56 = vrot.slane %v442_v54, 4 }
 0x456   :  { %v451_v57 = vsel %vm348_vm5, %v450_v55, 0.0  ;;  %v557_v55 = vld [vmem:[%s1820_s2 + $0xa] sm:$0x1] }
 0x457   :  { %v444_v58 = vadd.f32 %v443_v56, %v442_v54  ;;  %v452_v59 = vrot.slane %v451_v57, 4 }
 0x459   :  { %v445_v60 = vrot.slane %v444_v58, 2  ;;  %v453_v61 = vadd.f32 %v452_v59, %v451_v57 }
 0x45b   :  { %v446_v62 = vadd.f32 %v445_v60, %v444_v58  ;;  %v454_v63 = vrot.slane %v453_v61, 2  ;;  %v558_v58 = vld [vmem:[%s1820_s2 + $0xb] sm:$0x1] }
 0x45d   :  { %v447_v1 = vrot.slane %v446_v62, 1  ;;  %v455_v2 = vadd.f32 %v454_v63, %v453_v61 }
 0x45f   :  { %v448_v3 = vadd.f32 %v447_v1, %v446_v62  ;;  %v456_v4 = vrot.slane %v455_v2, 1 }
 0x461   :  { %v449_v5 = vmul.f32 0.125, %v448_v3  ;;  %v457_v6 = vadd.f32 %v456_v4, %v455_v2  ;;  %v720_v3 = vld [vmem:[%s1818_s1 + $0x158] sm:$0xf]  ;;  %v719_v4 = vld [vmem:[%s1818_s1 + $0x150] sm:$0xff] }
 0x462   :  { %1301 = vmatpush3.msk.msra.mxu0 %vm152_vm1, %v720_v3  ;;  %vm1028_vm1 = vcmask 31744  }
 0x463   :  { %v458_v7 = vmul.f32 0.125, %v457_v6  ;;  %v459_v8 = vmul.f32 %v449_v5, %v449_v5  ;;  %1302 = vmatprep.subr.mxu0 %v1389_v0  ;;  %v717_v6 = vld [vmem:[%s1818_s1 + $0x140] sm:$0xff] }
 0x464   :  { %1303 = vmatpush3.msra.mxu0 %v719_v4 }
 0x465   :  { %v460_v9 = vsub.f32 %v458_v7, %v459_v8  ;;  %1304 = vmatprep.subr.mxu0 %v1389_v0  ;;  %v716_v7 = vld [vmem:[%s1818_s1 + $0x138] sm:$0xff]  ;;  %v715_v8 = vld [vmem:[%s1818_s1 + $0x130] sm:$0xff] }
 0x467   :  { %v461_v10 = vmax.f32 %v460_v9, 0.0  ;;  %v714_v9 = vld [vmem:[%s1818_s1 + $0x128] sm:$0xff] }
 0x469   :  { %v462_v11 = vadd.f32 1e-05, %v461_v10  ;;  %v713_v10 = vld [vmem:[%s1818_s1 + $0x120] sm:$0xff] }
 0x46b   :  { %1355 = vrsqrt.f32 %v462_v11 }
 0x478   :  { %v1356_v13 = vpop.eup %1355 }
 0x479   :  { %v464_v14 = vmul.f32 %v1356_v13, %v440_v12 }
 0x47b   :  { %v468_v18 = vrot.slane %v464_v14, %v1543_v52  ;;  %v470_v19 = vmul.f32 %v464_v14, %v449_v5  ;;  %v718_v5 = vld [vmem:[%s1818_s1 + $0x148] sm:$0xff] }
 0x47c   :  { %1305 = vmatpush3.msra.mxu0 %v718_v5 }
 0x47d   :  { %v471_v20 = vsub.f32 %v441_v16, %v470_v19  ;;  %v469_v21 = vmul.f32 %v468_v18, %v439_v53  ;;  %1306 = vmatprep.subr.mxu0 %v1389_v0 }
 0x47e   :  { %1307 = vmatpush3.msra.mxu0 %v717_v6 }
 0x47f   :  { %v475_v22 = vrot.slane %v471_v20, %v1543_v52  ;;  %1308 = vmatprep.subr.mxu0 %v1389_v0 }
 0x480   :  { %1309 = vmatpush3.msra.mxu0 %v716_v7 }
 0x481   :  { %v476_v23 = vadd.f32 %v475_v22, %v469_v21  ;;  %1310 = vmatprep.subr.mxu0 %v1389_v0 }
 0x482   :  { %1311 = vmatpush3.msra.mxu0 %v715_v8  ;;  %v797_v8 = vld [vmem:[%s1820_s2 + $0xe] sm:$0x1] }
 0x483   :  { %1357 = vtanh.f32 %v476_v23  ;;  %1312 = vmatprep.subr.mxu0 %v1389_v0 }
 0x484   :  { %1313 = vmatpush3.msra.mxu0 %v714_v9 }
 0x485   :  { %1314 = vmatprep.subr.mxu0 %v1389_v0 }
 0x486   :  { %1315 = vmatpush3.msra.mxu0 %v713_v10 }
 0x490   :  { %v1358_v24 = vpop.eup %1357 }
 0x491   :  { %1287 = vmatmul.mubr.msk.f32.vlgmr.msra.gmra.mxu1 %vm348_vm5, %v1358_v24 }
 0x492   :  { %1297 = vmatprep.mubr.msk.f32.mxu1 %vm1390_vm0, %v1389_v0  ;;  %1290 = vmatpush3.msk.msra.mxu1 %vm272_vm3, %v598_v25  ;;  %vm1121_vm0 = vcmask 1040384   ;;  %vm1032_vm3 = vcmask 48128  }
 0x493   :  { %1291 = vmatprep.subr.mxu1 %v1389_v0 }
 0x494   :  { %1292 = vmatpush3.msra.mxu1 %v597_v26 }
 0x495   :  { %1293 = vmatprep.subr.mxu1 %v1389_v0 }
 0x496   :  { %1294 = vmatpush3.msra.mxu1 %v596_v27 }
 0x497   :  { %1295 = vmatprep.subr.mxu1 %v1389_v0 }
 0x498   :  { %1296 = vmatpush3.msra.mxu1 %v595_v28 }
 0x551   :  { %v553_v29 = vpop.f32.mrf.mxu1 }
 0x552   :  { %v559_v30 = vsel %vm228_vm4, %v553_v29, 0.0  ;;  %v567_v31 = vmul.f32 %v553_v29, %v553_v29 }
 0x553   :  { %v560_v32 = vrot.slane %v559_v30, 4  ;;  %v1288_v33 = vpop.f32.mrf.mxu1 }
 0x554   :  { %v568_v34 = vsel %vm228_vm4, %v567_v31, 0.0 }
 0x555   :  { %v561_v35 = vadd.f32 %v560_v32, %v559_v30  ;;  %v569_v36 = vrot.slane %v568_v34, 4 }
 0x557   :  { %v562_v37 = vrot.slane %v561_v35, 2  ;;  %v570_v38 = vadd.f32 %v569_v36, %v568_v34 }
 0x559   :  { %v563_v39 = vadd.f32 %v562_v37, %v561_v35  ;;  %v571_v40 = vrot.slane %v570_v38, 2  ;;  %v675_v35 = vld [vmem:[%s1820_s2 + $0xc] sm:$0x1] }
 0x55b   :  { %v564_v41 = vrot.slane %v563_v39, 1  ;;  %v572_v42 = vadd.f32 %v571_v40, %v570_v38  ;;  %v676_v38 = vld [vmem:[%s1820_s2 + $0xd] sm:$0x1] }
 0x55d   :  { %v565_v43 = vadd.f32 %v564_v41, %v563_v39  ;;  %v573_v44 = vrot.slane %v572_v42, 1 }
 0x55f   :  { %v566_v45 = vmul.f32 0.125, %v565_v43  ;;  %v574_v47 = vadd.f32 %v573_v44, %v572_v42 }
 0x561   :  { %v575_v48 = vmul.f32 0.125, %v574_v47  ;;  %v576_v49 = vmul.f32 %v566_v45, %v566_v45  ;;  %v835_v47 = vmul.f32 %v1495_v17, %v1495_v17 }
 0x563   :  { %v577_v51 = vsub.f32 %v575_v48, %v576_v49  ;;  %836 = vadd.xlane.f32.xlu1 %v835_v47 }
 0x565   :  { %v578_v53 = vmax.f32 %v577_v51, 0.0 }
 0x567   :  { %v579_v54 = vadd.f32 1e-05, %v578_v53 }
 0x569   :  { %1359 = vrsqrt.f32 %v579_v54 }
 0x576   :  { %v1360_v56 = vpop.eup %1359 }
 0x577   :  { %v581_v57 = vmul.f32 %v1360_v56, %v557_v55 }
 0x579   :  { %v585_v59 = vrot.slane %v581_v57, %v1543_v52  ;;  %v587_v60 = vmul.f32 %v581_v57, %v566_v45 }
 0x57b   :  { %v588_v61 = vsub.f32 %v558_v58, %v587_v60  ;;  %v586_v62 = vmul.f32 %v585_v59, %v553_v29 }
 0x57d   :  { %v592_v63 = vrot.slane %v588_v61, %v1543_v52 }
 0x57f   :  { %v593_v1 = vadd.f32 %v592_v63, %v586_v62 }
 0x581   :  { %1361 = vtanh.f32 %v593_v1 }
 0x58e   :  { %v1362_v2 = vpop.eup %1361 }
 0x58f   :  { %1298 = vmatmul.mubr.msk.f32.vlgmr.msra.gmra.mxu1 %vm228_vm4, %v1362_v2  ;;  %vm1034_vm4 = vcmask 56320  }
 0x64f   :  { %v671_v11 = vpop.f32.mrf.mxu1 }
 0x650   :  { %v677_v12 = vsel %vm103_vm2, %v671_v11, 0.0  ;;  %v685_v13 = vmul.f32 %v671_v11, %v671_v11 }
 0x651   :  { %v678_v14 = vrot.slane %v677_v12, 4  ;;  %v1299_v16 = vpop.f32.mrf.mxu1 }
 0x652   :  { %v686_v18 = vsel %vm103_vm2, %v685_v13, 0.0 }
 0x653   :  { %v679_v19 = vadd.f32 %v678_v14, %v677_v12  ;;  %v687_v20 = vrot.slane %v686_v18, 4 }
 0x655   :  { %v680_v21 = vrot.slane %v679_v19, 2  ;;  %v688_v22 = vadd.f32 %v687_v20, %v686_v18 }
 0x657   :  { %v681_v23 = vadd.f32 %v680_v21, %v679_v19  ;;  %v689_v24 = vrot.slane %v688_v22, 2 }
 0x659   :  { %v682_v25 = vrot.slane %v681_v23, 1  ;;  %v690_v26 = vadd.f32 %v689_v24, %v688_v22  ;;  %v1392_v24 = vmov 1  }
 0x65a   :  { %1339 = vset.pattern.permute.xlu0 %v1392_v24 }
 0x65b   :  { %v683_v27 = vadd.f32 %v682_v25, %v681_v23  ;;  %v691_v28 = vrot.slane %v690_v26, 1  ;;  %v837_v25 = vpop.xlane.xlu1 %836 }
 0x65c   :  { %vm840_vm7 = vcmp.eq.f32.partialorder %v837_v25, inf  ;;  %vm842_vm8 = vcmp.eq.f32.partialorder %v837_v25, 0.0 }
 0x65d   :  { %v684_v0 = vmul.f32 0.125, %v683_v27  ;;  %v692_v29 = vadd.f32 %v691_v28, %v690_v26 }
 0x65f   :  { %v693_v30 = vmul.f32 0.125, %v692_v29  ;;  %v694_v31 = vmul.f32 %v684_v0, %v684_v0  ;;  %v843_v29 = vand.u32 2147483648, %v837_v25 }
 0x661   :  { %v695_v32 = vsub.f32 %v693_v30, %v694_v31 }
 0x663   :  { %v696_v33 = vmax.f32 %v695_v32, 0.0 }
 0x665   :  { %v697_v34 = vadd.f32 1e-05, %v696_v33 }
 0x667   :  { %1363 = vrsqrt.f32 %v697_v34 }
 0x674   :  { %v1364_v36 = vpop.eup %1363 }
 0x675   :  { %v699_v37 = vmul.f32 %v1364_v36, %v675_v35 }
 0x677   :  { %v703_v39 = vrot.slane %v699_v37, %v1543_v52  ;;  %v705_v40 = vmul.f32 %v699_v37, %v684_v0 }
 0x679   :  { %v706_v41 = vsub.f32 %v676_v38, %v705_v40  ;;  %v704_v42 = vmul.f32 %v703_v39, %v671_v11  ;;  %v798_v11 = vld [vmem:[%s1820_s2 + $0xf] sm:$0x1] }
 0x67b   :  { %v710_v43 = vrot.slane %v706_v41, %v1543_v52 }
 0x67d   :  { %v711_v44 = vadd.f32 %v710_v43, %v704_v42 }
 0x67f   :  { %1365 = vtanh.f32 %v711_v44 }
 0x68c   :  { %v1366_v45 = vpop.eup %1365 }
 0x68d   :  { %1317 = vmatmul.mubr.msk.f32.vlgmr.msra.gmra.mxu0 %vm103_vm2, %v1366_v45  ;;  %vm1030_vm2 = vcmask 39936  }
 0x74d   :  { %v793_v48 = vpop.f32.mrf.mxu0 }
 0x74e   :  { %v799_v49 = vrot.slane %v793_v48, 4  ;;  %v806_v51 = vmul.f32 %v793_v48, %v793_v48 }
 0x74f   :  { %v1318_v53 = vpop.f32.mrf.mxu0 }
 0x750   :  { %v800_v54 = vadd.f32 %v799_v49, %v793_v48  ;;  %v807_v55 = vrot.slane %v806_v51, 4 }
 0x752   :  { %v801_v56 = vrot.slane %v800_v54, 2  ;;  %v808_v57 = vadd.f32 %v807_v55, %v806_v51  ;;  %v895_v55 = vsub.s32 1, %v1537_v50 }
 0x754   :  { %v802_v58 = vadd.f32 %v801_v56, %v800_v54  ;;  %v809_v59 = vrot.slane %v808_v57, 2  ;;  %v1393_v54 = vmov 2  }
 0x756   :  { %v803_v60 = vrot.slane %v802_v58, 1  ;;  %v810_v61 = vadd.f32 %v809_v59, %v808_v57 }
 0x758   :  { %v804_v62 = vadd.f32 %v803_v60, %v802_v58  ;;  %v811_v63 = vrot.slane %v810_v61, 1  ;;  %v905_v58 = vsub.s32 2, %v1537_v50  ;;  %v915_v50 = vld [vmem:[%s1818_s1 + $0x168] sm:$0x3] }
 0x75a   :  { %v805_v1 = vmul.f32 0.125, %v804_v62  ;;  %v812_v2 = vadd.f32 %v811_v63, %v810_v61 }
 0x75c   :  { %v813_v3 = vmul.f32 0.125, %v812_v2  ;;  %v814_v4 = vmul.f32 %v805_v1, %v805_v1 }
 0x75e   :  { %v815_v5 = vsub.f32 %v813_v3, %v814_v4 }
 0x760   :  { %v816_v6 = vmax.f32 %v815_v5, 0.0 }
 0x762   :  { %v817_v7 = vadd.f32 1e-05, %v816_v6  ;;  %v928_v6 = vrot.slane %v915_v50, %v895_v55 }
 0x764   :  { %1367 = vrsqrt.f32 %v817_v7  ;;  %v920_v7 = vrot.slane %v915_v50, %v1543_v52 }
 0x765   :  { %1369 = vrsqrt.f32 %v837_v25 }
 0x771   :  { %v1368_v9 = vpop.eup %1367 }
 0x772   :  { %v819_v10 = vmul.f32 %v1368_v9, %v797_v8  ;;  %v1370_v27 = vpop.eup %1369 }
 0x773   :  { %v839_v28 = vmul.f32 %v1370_v27, %v837_v25 }
 0x774   :  { %v823_v12 = vrot.slane %v819_v10, %v1543_v52  ;;  %v825_v13 = vmul.f32 %v819_v10, %v805_v1 }
 0x775   :  { %v841_v30 = vsel %vm840_vm7, %v837_v25, %v839_v28  ;;  %vm1039_vm7 = vcmask 72704  }
 0x776   :  { %v826_v14 = vsub.f32 %v798_v11, %v825_v13  ;;  %v824_v16 = vmul.f32 %v823_v12, %v793_v48  ;;  %v844_v33 = vsel %vm842_vm8, %v843_v29, %v841_v30  ;;  %v1168_v13 = vld [vmem:[%s1820_s2 + $0x11] ss:$0 sm:$0xff]  ;;  %vm1145_vm8 = vcmask 138240  }
 0x777   :  { %v855_v36 = vmax.f32 %v844_v33, 1e-08 }
 0x778   :  { %v830_v18 = vrot.slane %v826_v14, %v1543_v52 }
 0x77a   :  { %v831_v19 = vadd.f32 %v830_v18, %v824_v16 }
 0x77c   :  { %v845_v20 = vmul.f32 %v831_v19, %v831_v19  ;;  %v860_v21 = vsub.f32 %v1495_v17, %v831_v19  ;;  %1149 = vst [vmem:[%s1821_s3] sm:$0xff] %v831_v19  ;;  %v832_v23 = vmul.f32 %v831_v19, %v1495_v17 }
 0x77e   :  { %846 = vadd.xlane.f32.xlu1 %v845_v20  ;;  %v861_v22 = vmul.f32 %v860_v21, %v860_v21 }
 0x782   :  { %862 = vadd.xlane.f32.xlu1 %v861_v22 }
 0x786   :  { %833 = vadd.xlane.f32.xlu1 %v832_v23 }
 0x807   :  { %v847_v26 = vpop.xlane.xlu1 %846 }
 0x808   :  { %1371 = vrsqrt.f32 %v847_v26  ;;  %vm850_vm9 = vcmp.eq.f32.partialorder %v847_v26, inf  ;;  %v853_v17 = vand.u32 2147483648, %v847_v26  ;;  %vm852_vm10 = vcmp.eq.f32.partialorder %v847_v26, 0.0 }
 0x80b   :  { %v863_v0 = vpop.xlane.xlu1 %862 }
 0x80c   :  { %1373 = vrsqrt.f32 %v863_v0  ;;  %vm866_vm11 = vcmp.eq.f32.partialorder %v863_v0, inf  ;;  %v869_v42 = vand.u32 2147483648, %v863_v0  ;;  %vm868_vm12 = vcmp.eq.f32.partialorder %v863_v0, 0.0 }
 0x80f   :  { %v834_v45 = vpop.xlane.xlu1 %833 }
 0x815   :  { %v1372_v31 = vpop.eup %1371 }
 0x816   :  { %v849_v32 = vmul.f32 %v1372_v31, %v847_v26 }
 0x818   :  { %v851_v34 = vsel %vm850_vm9, %v847_v26, %v849_v32  ;;  %vm1147_vm9 = vcmask 154624  }
 0x819   :  { %v854_v35 = vsel %vm852_vm10, %v853_v17, %v851_v34  ;;  %v1374_v39 = vpop.eup %1373 }
 0x81a   :  { %v856_v37 = vmax.f32 %v854_v35, 1e-08  ;;  %v865_v40 = vmul.f32 %v1374_v39, %v863_v0 }
 0x81c   :  { %v857_v38 = vmul.f32 %v856_v37, %v855_v36  ;;  %v867_v41 = vsel %vm866_vm11, %v863_v0, %v865_v40 }
 0x81d   :  { %v870_v43 = vsel %vm868_vm12, %v869_v42, %v867_v41 }
 0x81e   :  { %1375 = vrcp.f32 %v857_v38 }
 0x81f   :  { %1377 = vrcp.f32 %v844_v33 }
 0x82b   :  { %v1376_v44 = vpop.eup %1375 }
 0x82c   :  { %v1378_v47 = vpop.eup %1377  ;;  %v859_v48 = vmul.f32 %v1376_v44, %v834_v45 }
 0x82d   :  { %v872_v49 = vmul.f32 %v1378_v47, %v870_v43 }
 0x82e   :  { %v874_v51 = vsel %vm873_vm13, %v1607_v46, %v859_v48  ;;  %v877_v46 = vld [vmem:[%s1818_s1 + $0x160] sm:$0x7]  ;;  %s1394_s1 = smov 127  }
 0x82f   :  { %v1724_v53 = vsel %vm875_vm14, %v874_v51, %v872_v49  ;;  %v896_v57 = vrot.slane %v877_v46, %v895_v55  ;;  %v887_v59 = vrot.slane %v877_v46, %v1543_v52  ;;  %v906_v62 = vrot.slane %v877_v46, %v905_v58 }
 0x830   :  { %881 = vperm.xlu1 %1335, %v1724_v53  }
 0x834   :  { %1336 = vset.pattern.permute.xlu1 %v1392_v24 }
 0x835   :  { %890 = vperm.xlu1 %1336, %v1724_v53  }
 0x839   :  { %1337 = vset.pattern.permute.xlu1 %v1393_v54 }
 0x83a   :  { %900 = vperm.xlu1 %1337, %v1724_v53  }
 0x83e   :  { %1338 = vset.pattern.permute.xlu1 %v1391_v15  ;;  %v1167_v15 = vld [vmem:[%s1820_s2 + $0x10] ss:$0 sm:$0xff]  ;;  %s1395_s2 = smov 3  }
 0x8ab   :  { %v882_v56 = vpop.permute.xlu1 %881 }
 0x8ac   :  { %v888_v63 = vmul.f32 %v887_v59, %v882_v56 }
 0x8b0   :  { %v891_v60 = vpop.permute.xlu1 %890 }
 0x8b1   :  { %v897_v61 = vmul.f32 %v896_v57, %v891_v60 }
 0x8b3   :  { %v898_v2 = vadd.f32 %v897_v61, %v888_v63 }
 0x8b5   :  { %v901_v1 = vpop.permute.xlu1 %900 }
 0x8b6   :  { %v907_v3 = vmul.f32 %v906_v62, %v901_v1 }
 0x8b8   :  { %v908_v4 = vadd.f32 %v907_v3, %v898_v2 }
 0x8ba   :  { %v913_v5 = vadd.f32 %v1167_v15, %v908_v4 }
 0x8bc   :  { %1379 = vtanh.f32 %v913_v5 }
 0x8c9   :  { %v1380_v8 = vpop.eup %1379 }
 0x8ca   :  { %v929_v9 = vmul.f32 %v1380_v8, %v928_v6  ;;  %v921_v10 = vmul.f32 %v1380_v8, %v920_v7 }
 0x8cc   :  { %v930_v11 = vsel %vm348_vm5, %v929_v9, 0.0  ;;  %v922_v12 = vsel %vm348_vm5, %v921_v10, 0.0  ;;  %vm1036_vm5 = vcmask 64512  }
 0x8cd   :  { %931 = vadd.xlane.f32.xlu0 %v930_v11  ;;  %923 = vadd.xlane.f32.xlu1 %v922_v12 }
 0x956   :  { %v932_v14 = vpop.xlane.xlu0 %931  ;;  %v924_v16 = vpop.xlane.xlu1 %923 }
 0x957   :  { %v933_v18 = vsel %vm873_vm13, %v924_v16, %v932_v14 }
 0x958   :  { %v938_v19 = vadd.f32 %v1168_v13, %v933_v18 }
 0x95a   :  { %v939_v52 = vsel %vm875_vm14, %v938_v19, -inf }
 0x95b   :  { %v940_v20 = vrot.slane %v939_v52, 4 }
 0x95d   :  { %v941_v21 = vmax.f32 %v939_v52, %v940_v20 }
 0x95f   :  { %v942_v22 = vrot.slane %v941_v21, 2 }
 0x961   :  { %v943_v23 = vmax.f32 %v941_v21, %v942_v22 }
 0x963   :  { %v944_v25 = vrot.slane %v943_v23, 1 }
 0x965   :  { %v945_v26 = vmax.f32 %v943_v23, %v944_v25 }
 0x967   :  { %v946_v27 = vsub.f32 %v938_v19, %v945_v26 }
 0x969   :  { %v947_v28 = vmul.f32 1.442695, %v946_v27 }
 0x96b   :  { %1381 = vpow2.f32 %v947_v28 }
 0x978   :  { %v1382_v0 = vpop.eup %1381 }
 0x979   :  { %v949_v29 = vsel %vm875_vm14, %v1382_v0, 0.0 }
 0x97a   :  { %v950_v30 = vrot.slane %v949_v29, 4 }
 0x97c   :  { %v951_v31 = vadd.f32 %v950_v30, %v949_v29 }
 0x97e   :  { %v952_v32 = vrot.slane %v951_v31, 2 }
 0x980   :  { %v953_v33 = vadd.f32 %v952_v32, %v951_v31 }
 0x982   :  { %v954_v17 = vrot.slane %v953_v33, 1 }
 0x984   :  { %v955_v34 = vadd.f32 %v954_v17, %v953_v33 }
 0x986   :  { %1383 = vrcp.f32 %v955_v34 }
 0x993   :  { %v1384_v35 = vpop.eup %1383 }
 0x994   :  { %v1752_v36 = vmul.f32 %v1384_v35, %v1382_v0 }
 0x996   :  { %1049 = vperm.xlu0 %1339, %v1752_v36   ;;  %968 = vperm.xlu1 %1338, %v1752_v36   ;;  %v958_v37 = vsel %vm875_vm14, %v1752_v36, 0.0 }
 0x997   :  { %v959_v38 = vrot.slane %v958_v37, 4 }
 0x999   :  { %v960_v39 = vadd.f32 %v959_v38, %v958_v37 }
 0x99b   :  { %v961_v40 = vrot.slane %v960_v39, 2 }
 0x99d   :  { %v962_v41 = vadd.f32 %v961_v40, %v960_v39 }
 0x99f   :  { %v963_v42 = vrot.slane %v962_v41, 1 }
 0x9a1   :  { %v1758_v43 = vadd.f32 %v963_v42, %v962_v41 }
 0x9a3   :  { %982 = vperm.xlu1 %1338, %v1758_v43   ;;  %v965_v20 = vmul.f32 0.125, %v1758_v43 }
 0x9a5   :  { %v1126_v21 = vsel %vm1121_vm0, %v965_v20, 0.0 }
 0x9a7   :  { %1340 = vset.pattern.permute.xlu1 %v1392_v24 }
 0x9a8   :  { %1061 = vperm.xlu1 %1340, %v1758_v43  }
 0xa11   :  { %v1763_v44 = vpop.permute.xlu1 %968  ;;  %v1765_v45 = vpop.permute.xlu0 %1049 }
 0xa12   :  { %v971_v47 = vmul.f32 %v1763_v44, %v1724_v53  ;;  %v1052_v49 = vmul.f32 %v1765_v45, %v1724_v53 }
 0xa14   :  { %v973_v48 = vsel %vm972_vm15, %v971_v47, 0.0  ;;  %v1053_v54 = vsel %vm972_vm15, %v1052_v49, 0.0 }
 0xa15   :  { %v974_v51 = vrot.slane %v973_v48, 4  ;;  %v1054_v24 = vrot.slane %v1053_v54, 4 }
 0xa17   :  { %v975_v55 = vadd.f32 %v974_v51, %v973_v48  ;;  %v1055_v57 = vadd.f32 %v1054_v24, %v1053_v54 }
 0xa19   :  { %v976_v46 = vrot.slane %v975_v55, 2  ;;  %v1056_v60 = vrot.slane %v1055_v57, 2 }
 0xa1b   :  { %v977_v58 = vadd.f32 %v976_v46, %v975_v55  ;;  %v1057_v62 = vadd.f32 %v1056_v60, %v1055_v57 }
 0xa1d   :  { %v978_v61 = vrot.slane %v977_v58, 1  ;;  %v1058_v2 = vrot.slane %v1057_v62, 1 }
 0xa1e   :  { %v983_v56 = vpop.permute.xlu1 %982 }
 0xa1f   :  { %1385 = vrcp.f32 %v983_v56  ;;  %v979_v63 = vadd.f32 %v978_v61, %v977_v58  ;;  %v1059_v4 = vadd.f32 %v1058_v2, %v1057_v62 }
 0xa23   :  { %v1062_v59 = vpop.permute.xlu1 %1061 }
 0xa24   :  { %1387 = vrcp.f32 %v1062_v59 }
 0xa2c   :  { %v1773_v1 = vpop.eup %1385 }
 0xa2d   :  { %v986_v3 = vmul.f32 %v1773_v1, %v979_v63 }
 0xa2f   :  { %v987_v15 = vsub.f32 %v1724_v53, %v986_v3 }
 0xa31   :  { %v1777_v5 = vpop.eup %1387  ;;  %990 = vrot.lane.b32.xlu1 %v987_v15, %s1394_s1  ;;  %v988_v50 = vmul.f32 %v987_v15, %v987_v15 }
 0xa32   :  { %v1065_v6 = vmul.f32 %v1777_v5, %v1059_v4 }
 0xa33   :  { %1010 = vrot.lane.b32.xlu0 %v988_v50, %s1395_s2 }
 0xa34   :  { %v1066_v7 = vsub.f32 %v1724_v53, %v1065_v6  ;;  %v1122_v8 = vsel %vm1121_vm0, %v986_v3, %v1065_v6 }
 0xa35   :  { %v1124_v52 = vsel %vm483_vm6, %v1122_v8, 0.0 }
 0xa36   :  { %1069 = vrot.lane.b32.xlu1 %v1066_v7, %s1394_s1  ;;  %v1067_v9 = vmul.f32 %v1066_v7, %v1066_v7 }
 0xa3a   :  { %994 = vrot.lane.b32.xlu1 %v987_v15, %s1396_s5 }
 0xa3e   :  { %1073 = vrot.lane.b32.xlu1 %v1066_v7, %s1396_s5 }
 0xa42   :  { %1089 = vrot.lane.b32.xlu1 %v1067_v9, %s1395_s2 }
 0xaa3   :  { %v991_v10 = vpop.permute.xlu1 %990 }
 0xaa4   :  { %v993_v11 = vmul.f32 %v991_v10, %v987_v15 }
 0xaa5   :  { %v1011_v25 = vpop.permute.xlu0 %1010 }
 0xaa6   :  { %999 = vrot.lane.b32.xlu1 %v993_v11, %s1397_s6 }
 0xaa8   :  { %v1070_v12 = vpop.permute.xlu1 %1069 }
 0xaa9   :  { %v1072_v13 = vmul.f32 %v1070_v12, %v1066_v7 }
 0xaab   :  { %1078 = vrot.lane.b32.xlu1 %v1072_v13, %s1397_s6 }
 0xaac   :  { %v995_v14 = vpop.permute.xlu1 %994 }
 0xaad   :  { %v997_v16 = vmul.f32 %v995_v14, %v987_v15 }
 0xaaf   :  { %1003 = vrot.lane.b32.xlu0 %v997_v16, %s1398_s7 }
 0xab0   :  { %v1074_v18 = vpop.permute.xlu1 %1073 }
 0xab1   :  { %v1076_v19 = vmul.f32 %v1074_v18, %v1066_v7 }
 0xab3   :  { %1006 = vrot.lane.b32.xlu0 %v993_v11, %s1395_s2  ;;  %1082 = vrot.lane.b32.xlu1 %v1076_v19, %s1398_s7 }
 0xab4   :  { %v1090_v22 = vpop.permute.xlu1 %1089 }
 0xab7   :  { %1013 = vrot.lane.b32.xlu0 %v993_v11, %s1399_s8  ;;  %1085 = vrot.lane.b32.xlu1 %v1072_v13, %s1395_s2 }
 0xabb   :  { %1016 = vrot.lane.b32.xlu0 %v997_v16, %s1400_s9  ;;  %1092 = vrot.lane.b32.xlu1 %v1072_v13, %s1399_s8 }
 0xabf   :  { %1019 = vrot.lane.b32.xlu0 %v993_v11, %s1400_s9  ;;  %1095 = vrot.lane.b32.xlu1 %v1076_v19, %s1400_s9 }
 0xac3   :  { %1022 = vrot.lane.b32.xlu0 %v988_v50, %s1400_s9  ;;  %1098 = vrot.lane.b32.xlu1 %v1072_v13, %s1400_s9 }
 0xac7   :  { %1127 = vrot.lane.b32.xlu0 %v1752_v36, %s1395_s2  ;;  %1101 = vrot.lane.b32.xlu1 %v1067_v9, %s1400_s9 }
 0xacb   :  { %1131 = vrot.lane.b32.xlu1 %v1124_v52, %s1401_s10 }
 0xacf   :  { %1139 = vrot.lane.b32.xlu1 %v1126_v21, %s1402_s11 }
 0xb18   :  { %v1000_v23 = vpop.permute.xlu1 %999 }
 0xb19   :  { %v1025_v31 = vsel %vm873_vm13, %v988_v50, %v1000_v23 }
 0xb1d   :  { %v1079_v26 = vpop.permute.xlu1 %1078 }
 0xb1e   :  { %v1104_v35 = vsel %vm873_vm13, %v1067_v9, %v1079_v26 }
 0xb21   :  { %v1004_v27 = vpop.permute.xlu0 %1003 }
 0xb22   :  { %v1026_v17 = vsel %vm875_vm14, %v1025_v31, %v1004_v27 }
 0xb25   :  { %v1007_v28 = vpop.permute.xlu0 %1006  ;;  %v1083_v0 = vpop.permute.xlu1 %1082 }
 0xb26   :  { %v1027_v34 = vsel %vm972_vm15, %v1026_v17, %v1007_v28  ;;  %v1105_v38 = vsel %vm875_vm14, %v1104_v35, %v1083_v0 }
 0xb27   :  { %v1029_v39 = vsel %vm1028_vm1, %v1027_v34, %v1011_v25 }
 0xb29   :  { %v1014_v29 = vpop.permute.xlu0 %1013  ;;  %v1086_v30 = vpop.permute.xlu1 %1085 }
 0xb2a   :  { %v1031_v40 = vsel %vm1030_vm2, %v1029_v39, %v1014_v29  ;;  %v1106_v41 = vsel %vm972_vm15, %v1105_v38, %v1086_v30 }
 0xb2b   :  { %v1107_v49 = vsel %vm1028_vm1, %v1106_v41, %v1090_v22 }
 0xb2d   :  { %v1017_v32 = vpop.permute.xlu0 %1016  ;;  %v1093_v33 = vpop.permute.xlu1 %1092 }
 0xb2e   :  { %v1033_v42 = vsel %vm1032_vm3, %v1031_v40, %v1017_v32  ;;  %v1108_v54 = vsel %vm1030_vm2, %v1107_v49, %v1093_v33 }
 0xb31   :  { %v1020_v36 = vpop.permute.xlu0 %1019  ;;  %v1096_v37 = vpop.permute.xlu1 %1095 }
 0xb32   :  { %v1035_v43 = vsel %vm1034_vm4, %v1033_v42, %v1020_v36  ;;  %v1109_v24 = vsel %vm1032_vm3, %v1108_v54, %v1096_v37 }
 0xb35   :  { %v1023_v47 = vpop.permute.xlu0 %1022  ;;  %v1099_v48 = vpop.permute.xlu1 %1098 }
 0xb36   :  { %v1037_v51 = vsel %vm1036_vm5, %v1035_v43, %v1023_v47  ;;  %v1110_v46 = vsel %vm1034_vm4, %v1109_v24, %v1099_v48 }
 0xb37   :  { %v1038_v55 = vmul.f32 %v1037_v51, %v1763_v44 }
 0xb39   :  { %v1040_v56 = vsel %vm1039_vm7, %v1038_v55, 0.0  ;;  %v1102_v57 = vpop.permute.xlu1 %1101  ;;  %v1128_v13 = vpop.permute.xlu0 %1127 }
 0xb3a   :  { %v1041_v58 = vrot.slane %v1040_v56, 4  ;;  %v1111_v59 = vsel %vm1036_vm5, %v1110_v46, %v1102_v57  ;;  %v1142_v14 = vsel %vm972_vm15, %v1724_v53, %v1128_v13 }
 0xb3b   :  { %v1112_v60 = vmul.f32 %v1111_v59, %v1765_v45 }
 0xb3c   :  { %v1042_v61 = vadd.f32 %v1041_v58, %v1040_v56 }
 0xb3d   :  { %v1113_v62 = vsel %vm1039_vm7, %v1112_v60, 0.0  ;;  %v1132_v12 = vpop.permute.xlu1 %1131 }
 0xb3e   :  { %v1043_v63 = vrot.slane %v1042_v61, 2  ;;  %v1114_v2 = vrot.slane %v1113_v62, 4  ;;  %v1143_v16 = vsel %vm1030_vm2, %v1142_v14, %v1132_v12 }
 0xb40   :  { %v1044_v3 = vadd.f32 %v1043_v63, %v1042_v61  ;;  %v1115_v15 = vadd.f32 %v1114_v2, %v1113_v62 }
 0xb41   :  { %v1140_v19 = vpop.permute.xlu1 %1139 }
 0xb42   :  { %v1045_v4 = vrot.slane %v1044_v3, 1  ;;  %v1116_v50 = vrot.slane %v1115_v15, 2 }
 0xb44   :  { %v1117_v6 = vadd.f32 %v1116_v50, %v1115_v15  ;;  %v1046_v7 = vadd.f32 %v1045_v4, %v1044_v3 }
 0xb46   :  { %v1118_v44 = vrot.slane %v1117_v6, 1  ;;  %v1047_v9 = vmul.f32 %v1773_v1, %v1046_v7 }
 0xb48   :  { %v1119_v8 = vadd.f32 %v1118_v44, %v1117_v6 }
 0xb4a   :  { %v1120_v10 = vmul.f32 %v1777_v5, %v1119_v8 }
 0xb4c   :  { %v1123_v11 = vsel %vm1121_vm0, %v1047_v9, %v1120_v10 }
 0xb4d   :  { %v1125_v45 = vsel %vm483_vm6, %v1123_v11, 0.0 }
 0xb4e   :  { %1135 = vrot.lane.b32.xlu0 %v1125_v45, %s1403_s12 }
 0xbc0   :  { %v1136_v18 = vpop.permute.xlu0 %1135 }
 0xbc1   :  { %v1144_v1 = vsel %vm1036_vm5, %v1143_v16, %v1136_v18 }
 0xbc2   :  { %v1146_v5 = vsel %vm1145_vm8, %v1144_v1, %v1140_v19 }
 0xbc3   :  { %v1148_v52 = vsel %vm1147_vm9, %v1146_v5, 0.0 }
 0xbc4   :  { %1150 = vst [vmem:[%s1821_s3 + $0x8] sm:$0xff] %v1148_v52 }

</bundles_post_ra>
